<compile_context>
chip_gen: v7x
topology: tpu7x:2x2x1
jax: 0.10.0
libtpu: 0.0.40
codegen_flags: <defaults>
</compile_context>

<pallas_src>
import functools

import jax
import jax.numpy as jnp
from jax.experimental import pallas as pl
from jax.experimental.pallas import tpu as pltpu


def _iconv_kernel(pep_ref, mhc_ref, w_ref, b_ref, out_ref, *, stride):
    """One grid step == NB batch elements.

    pep_ref : (NB, P, D)   f32  peptide embeddings (cast to bf16 in-kernel)
    mhc_ref : (NB*D, L)    bf16 MHC slab; row n*D + d holds mhc[n, :, d]
    w_ref   : (L, K*O)     bf16 conv weight, w_ref[l, k*O + o] = weight[o, k, l]
    b_ref   : (1, O, 1)    f32  bias
    out_ref : (NB, O, T)   f32  result — already in (O, T) order, no wrapper transpose
    """
    NB, _, D = pep_ref.shape
    L, KO = w_ref.shape
    _, O, T = out_ref.shape
    K = KO // O

    # ---- stage 1: dynamic per-sample kernel, ONE shared-weight MXU matmul ----------
    #   ker_flat[n*D + d, k*O + o] = relu( sum_l mhc[n, l, d] * weight[o, k, l] )
    ker_flat = jnp.dot(mhc_ref[...], w_ref[...],
                       preferred_element_type=jnp.float32)            # (NB*D, K*O)
    ker_flat = jnp.maximum(ker_flat, 0.0).astype(jnp.bfloat16)        # relu -> bf16

    # Re-pack to (NB, K*D, O): lane slice per tap + leading-dim split + sublane concat
    # (all layout-cheap, D is a multiple of 8).  Contraction index is j = k*D + d.
    ker_parts = [ker_flat[:, k * O:(k + 1) * O].reshape(NB, D, O) for k in range(K)]
    ker = ker_parts[0] if K == 1 else jnp.concatenate(ker_parts, axis=1)   # (NB, K*D, O)

    # ---- im2col windows with the same j = k*D + d ordering --------------------------
    pep = pep_ref[...].astype(jnp.bfloat16)                            # (NB, P, D)
    if stride == 1:
        pep_parts = [pep[:, k:k + T, :] for k in range(K)]
    else:
        # strided sublane reads: least-exercised lowering; ImmuScope always uses stride=1.
        pep_parts = [pep[:, k:k + (T - 1) * stride + 1:stride, :] for k in range(K)]
    pep_win = pep_parts[0] if K == 1 else jnp.concatenate(pep_parts, axis=2)  # (NB, T, K*D)

    # ---- stage 2: ker as LHS -> (NB, O, T) directly, f32 accumulation ---------------
    conv = jax.lax.dot_general(
        ker, pep_win,
        dimension_numbers=(((1,), (2,)), ((0,), (0,))),
        preferred_element_type=jnp.float32)                            # (NB, O, T)

    out_ref[...] = conv + b_ref[...]                                   # bias broadcast


def iconv_forward(peptide_x, mhc_x, weight, bias, *, stride=1, block_bs=128):
    """Pallas implementation of IConv.forward.

    peptide_x : (bs, P, D) float32
    mhc_x     : (bs, L, D) float32
    weight    : (O, K, L)  float32
    bias      : (O,)       float32
    returns   : (bs, O, T) float32 with T = (P - K)//stride + 1
    """
    bs, P, D = peptide_x.shape
    _, L, Dm = mhc_x.shape
    O, K, Lw = weight.shape
    assert Lw == L and Dm == D
    T = (P - K) // stride + 1

    # Batch-block size.  block_bs=128 keeps the per-step VMEM footprint well under the
    # 16 MiB v5e scoped default (lane padding to 128 included), so no explicit
    # vmem_limit_bytes is required on any generation.  Pick block_bs dividing bs (and
    # giving >= num_cores grid steps on multi-core parts) to avoid the pad pass.
    NB = max(1, min(block_bs, bs))
    bs_pad = -(-bs // NB) * NB
    pad = bs_pad - bs

    pep = peptide_x
    mhc = mhc_x
    if pad:
        pep = jnp.pad(pep, ((0, pad), (0, 0), (0, 0)))
        mhc = jnp.pad(mhc, ((0, pad), (0, 0), (0, 0)))

    # Wrapper-side layout plumbing:
    #   * mhc slab (bs_pad*D, L): row n*D+d == mhc[n,:,d]; the bf16 cast is fused into
    #     this single pass (XLA fuses transpose+reshape+cast), enabling the shared-weight
    #     stage-1 matmul in the kernel.
    #   * weight (L, K*O) and bias (1, O, 1) are tiny, prepped once.
    mhc2 = jnp.transpose(mhc, (0, 2, 1)).reshape(bs_pad * D, L).astype(jnp.bfloat16)
    w2 = jnp.transpose(weight, (2, 1, 0)).reshape(L, K * O).astype(jnp.bfloat16)
    b3 = bias.reshape(1, O, 1).astype(jnp.float32)

    grid = (bs_pad // NB,)
    kernel = functools.partial(_iconv_kernel, stride=stride)

    flops = 2 * bs_pad * (D * L * K * O + O * T * K * D)
    bytes_accessed = (pep.size * 4 + mhc2.size * 2 + w2.size * 2
                      + b3.size * 4 + bs_pad * O * T * 4)

    out = pl.pallas_call(
        kernel,
        out_shape=jax.ShapeDtypeStruct((bs_pad, O, T), jnp.float32),
        grid=grid,
        in_specs=[
            pl.BlockSpec((NB, P, D), lambda g: (g, 0, 0)),     # peptide block (f32)
            pl.BlockSpec((NB * D, L), lambda g: (g, 0)),       # mhc slab block (bf16)
            pl.BlockSpec((L, K * O), lambda g: (0, 0)),        # shared weight
            pl.BlockSpec((1, O, 1), lambda g: (0, 0, 0)),      # shared bias
        ],
        out_specs=pl.BlockSpec((NB, O, T), lambda g: (g, 0, 0)),
        compiler_params=pltpu.CompilerParams(
            dimension_semantics=("parallel",),
        ),
        cost_estimate=pl.CostEstimate(
            flops=flops, transcendentals=0, bytes_accessed=bytes_accessed),
    )(pep, mhc2, w2, b3)

    return out[:bs] if pad else out                     # (bs, O, T), no transpose


def _reference(peptide_x, mhc_x, weight, bias, *, stride=1):
    """Pure-JAX (f32) re-statement of the PyTorch forward (for verification)."""
    bs, P, D = peptide_x.shape
    O, K, L = weight.shape
    T = (P - K) // stride + 1
    ker = jax.nn.relu(jnp.einsum("nld,okl->nodk", mhc_x, weight))      # (bs,O,D,K)
    idx = jnp.arange(T)[:, None] * stride + jnp.arange(K)[None, :]     # (T,K)
    pep_win = peptide_x[:, idx, :]                                     # (bs,T,K,D)
    out = jnp.einsum("ntkd,nodk->not", pep_win, ker)
    return out + bias[None, :, None]


if __name__ == "__main__":
    # ImmuScope IConv shapes: emb_size=16, mhc_len=34; small batch for the demo.
    bs, P, D = 100, 16, 16        # batch, peptide length, embedding dim
    O, K, L = 4, 3, 34            # out_channels, kernel_size, mhc_len
    stride = 1

    key = jax.random.PRNGKey(0)
    k_pep, k_mhc, k_w, k_b = jax.random.split(key, 4)

    peptide_x = jax.random.normal(k_pep, (bs, P, D), dtype=jnp.float32)
    mhc_x = jax.random.normal(k_mhc, (bs, L, D), dtype=jnp.float32)
    # truncated_normal_(weight, std=0.02) per reset_parameters; nonzero bias to
    # exercise the bias-add path (PyTorch init is zeros, forward semantics identical).
    weight = 0.02 * jax.random.truncated_normal(k_w, -2.0, 2.0, (O, K, L), dtype=jnp.float32)
    bias = 0.1 * jax.random.normal(k_b, (O,), dtype=jnp.float32)

    # block_bs=32 exercises a multi-step grid and the batch-padding path (100 -> 128).
    fwd = jax.jit(functools.partial(iconv_forward, stride=stride, block_bs=32))
    out = jax.block_until_ready(fwd(peptide_x, mhc_x, weight, bias))

    ref = _reference(peptide_x, mhc_x, weight, bias, stride=stride)
    assert out.shape == (bs, O, (P - K) // stride + 1), out.shape
    # bf16 MXU operands / f32 accumulation -> relaxed tolerance vs. the f32 reference.
    assert jnp.allclose(out, ref, atol=3e-2, rtol=3e-2), float(jnp.max(jnp.abs(out - ref)))

    print("KERNEL_OK")
</pallas_src>

<mosaic_0001>
module attributes {stable_mosaic.version = 11 : i64} {
  func.func @_iconv_kernel(%arg0: i32, %arg1: memref<32x16x16xf32, #tpu.memory_space<vmem>>, %arg2: memref<512x34xbf16, #tpu.memory_space<vmem>>, %arg3: memref<34x12xbf16, #tpu.memory_space<vmem>>, %arg4: memref<1x4x1xf32, #tpu.memory_space<vmem>>, %arg5: memref<32x4x14xf32, #tpu.memory_space<vmem>>) attributes {dimension_semantics = [#tpu.dimension_semantics<parallel>], iteration_bounds = array<i64: 4>, scalar_prefetch = 0 : i64, scratch_operands = 0 : i64, tpu.core_type = #tpu.core_type<tc>, window_params = [{transform_indices = @transform_0, window_bounds = array<i64: 32, 16, 16>}, {transform_indices = @transform_1, window_bounds = array<i64: 512, 34>}, {pipeline_mode = #tpu.pipeline_mode<synchronous>, transform_indices = @transform_2, window_bounds = array<i64: 34, 12>}, {pipeline_mode = #tpu.pipeline_mode<synchronous>, transform_indices = @transform_3, window_bounds = array<i64: 1, 4, 1>}, {transform_indices = @transform_4, window_bounds = array<i64: 32, 4, 14>}]} {
    %c0 = arith.constant 0 : index
    %c0_0 = arith.constant 0 : index
    %0 = vector.load %arg2[%c0, %c0_0] : memref<512x34xbf16, #tpu.memory_space<vmem>>, vector<512x34xbf16>
    %c0_1 = arith.constant 0 : index
    %c0_2 = arith.constant 0 : index
    %1 = vector.load %arg3[%c0_1, %c0_2] : memref<34x12xbf16, #tpu.memory_space<vmem>>, vector<34x12xbf16>
    %cst = arith.constant dense<0.000000e+00> : vector<512x12xf32>
    %2 = tpu.matmul %0, %1, %cst {dimension_numbers = #tpu.dot_dimension_numbers<[1], [0], [0], [1], [0, 0, 1, 1], [], []>} : vector<512x34xbf16>, vector<34x12xbf16>, vector<512x12xf32> -> vector<512x12xf32>
    %cst_3 = arith.constant 0.000000e+00 : f32
    %3 = vector.broadcast %cst_3 : f32 to vector<512x12xf32>
    %4 = arith.maximumf %2, %3 : vector<512x12xf32>
    %5 = arith.truncf %4 : vector<512x12xf32> to vector<512x12xbf16>
    %6 = vector.extract_strided_slice %5 {offsets = [0, 0], sizes = [512, 4], strides = [1, 1]} : vector<512x12xbf16> to vector<512x4xbf16>
    %7 = vector.shape_cast %6 : vector<512x4xbf16> to vector<32x16x4xbf16>
    %8 = vector.extract_strided_slice %5 {offsets = [0, 4], sizes = [512, 4], strides = [1, 1]} : vector<512x12xbf16> to vector<512x4xbf16>
    %9 = vector.shape_cast %8 : vector<512x4xbf16> to vector<32x16x4xbf16>
    %10 = vector.extract_strided_slice %5 {offsets = [0, 8], sizes = [512, 4], strides = [1, 1]} : vector<512x12xbf16> to vector<512x4xbf16>
    %11 = vector.shape_cast %10 : vector<512x4xbf16> to vector<32x16x4xbf16>
    %12 = tpu.concatenate %7, %9, %11 in 1 : vector<32x16x4xbf16>, vector<32x16x4xbf16>, vector<32x16x4xbf16> -> vector<32x48x4xbf16>
    %c0_4 = arith.constant 0 : index
    %c0_5 = arith.constant 0 : index
    %c0_6 = arith.constant 0 : index
    %13 = vector.load %arg1[%c0_4, %c0_5, %c0_6] : memref<32x16x16xf32, #tpu.memory_space<vmem>>, vector<32x16x16xf32>
    %14 = arith.truncf %13 : vector<32x16x16xf32> to vector<32x16x16xbf16>
    %15 = vector.extract_strided_slice %14 {offsets = [0, 0, 0], sizes = [32, 14, 16], strides = [1, 1, 1]} : vector<32x16x16xbf16> to vector<32x14x16xbf16>
    %16 = vector.extract_strided_slice %14 {offsets = [0, 1, 0], sizes = [32, 14, 16], strides = [1, 1, 1]} : vector<32x16x16xbf16> to vector<32x14x16xbf16>
    %17 = vector.extract_strided_slice %14 {offsets = [0, 2, 0], sizes = [32, 14, 16], strides = [1, 1, 1]} : vector<32x16x16xbf16> to vector<32x14x16xbf16>
    %18 = tpu.concatenate %15, %16, %17 in 2 : vector<32x14x16xbf16>, vector<32x14x16xbf16>, vector<32x14x16xbf16> -> vector<32x14x48xbf16>
    %cst_7 = arith.constant dense<0.000000e+00> : vector<32x4x14xf32>
    %19 = tpu.matmul %12, %18, %cst_7 {dimension_numbers = #tpu.dot_dimension_numbers<[1], [2], [2], [1], [0, 0, 0, 2, 1, 1], [0], [0]>} : vector<32x48x4xbf16>, vector<32x14x48xbf16>, vector<32x4x14xf32> -> vector<32x4x14xf32>
    %c0_8 = arith.constant 0 : index
    %c0_9 = arith.constant 0 : index
    %c0_10 = arith.constant 0 : index
    %20 = vector.load %arg4[%c0_8, %c0_9, %c0_10] : memref<1x4x1xf32, #tpu.memory_space<vmem>>, vector<1x4x1xf32>
    %21 = vector.broadcast %20 : vector<1x4x1xf32> to vector<32x4x14xf32>
    %22 = arith.addf %19, %21 : vector<32x4x14xf32>
    %c0_11 = arith.constant 0 : index
    %c0_12 = arith.constant 0 : index
    %c0_13 = arith.constant 0 : index
    %23 = vector.load %arg5[%c0_11, %c0_12, %c0_13] : memref<32x4x14xf32, #tpu.memory_space<vmem>>, vector<32x4x14xf32>
    tpu.vector_store %arg5[%c0_11, %c0_12, %c0_13], %22 {strides = array<i32>} : memref<32x4x14xf32, #tpu.memory_space<vmem>>, vector<32x4x14xf32>,
    return
  }
  func.func @transform_0(%arg0: i32) -> (i32, i32, i32) {
    %c0_i32 = arith.constant 0 : i32
    %c0_i32_0 = arith.constant 0 : i32
    %c0_i32_1 = arith.constant 0 : i32
    return %arg0, %c0_i32, %c0_i32_0 : i32, i32, i32
  }
  func.func @transform_1(%arg0: i32) -> (i32, i32) {
    %c0_i32 = arith.constant 0 : i32
    %c0_i32_0 = arith.constant 0 : i32
    return %arg0, %c0_i32 : i32, i32
  }
  func.func @transform_2(%arg0: i32) -> (i32, i32) {
    %c0_i32 = arith.constant 0 : i32
    %c0_i32_0 = arith.constant 0 : i32
    %c0_i32_1 = arith.constant 0 : i32
    return %c0_i32, %c0_i32_0 : i32, i32
  }
  func.func @transform_3(%arg0: i32) -> (i32, i32, i32) {
    %c0_i32 = arith.constant 0 : i32
    %c0_i32_0 = arith.constant 0 : i32
    %c0_i32_1 = arith.constant 0 : i32
    %c0_i32_2 = arith.constant 0 : i32
    return %c0_i32, %c0_i32_0, %c0_i32_1 : i32, i32, i32
  }
  func.func @transform_4(%arg0: i32) -> (i32, i32, i32) {
    %c0_i32 = arith.constant 0 : i32
    %c0_i32_0 = arith.constant 0 : i32
    %c0_i32_1 = arith.constant 0 : i32
    return %arg0, %c0_i32, %c0_i32_0 : i32, i32, i32
  }
}

</mosaic_0001>

<bundles_post_ra>
// kernel: iconv_forward.1
= control target key start
LH: loop header
LB: loop body
LE: loop exit
PB: predicated region body
PF: predicated region fallthrough
CT: control target
= control target key end

     0   :  { %s4451_s15 = smov 0   ;;  %s5696_s0 = inlined_call_operand.vmem [shape: f32[128,16,16], index: 0, kind: input, shape index: {}]   ;;  %s5697_s1 = inlined_call_operand.vmem [shape: bf16[2048,34], index: 1, kind: input, shape index: {}]   ;;  %s5698_s2 = inlined_call_operand.vmem [shape: bf16[34,12], index: 2, kind: input, shape index: {}]   ;;  %s5699_s3 = inlined_call_operand.vmem [shape: f32[1,4,1], index: 3, kind: input, shape index: {}]   ;;  %s5700_s4 = inlined_call_operand.vmem [shape: f32[128,4,14], index: 4, kind: output, shape index: {}]  }
   0x1 LB: > { %s3883_s16 = sadd.s32 4294967295, %s4417_s15   ;;  %p3887_p0 = scmp.ge.s32.totalorder %s4417_s15, 1  ;;  %s4417_s15 = sphi %s4451_s15, %s14_s15  }
   0x2   : > { %p175_p1 = scmp.lt.s32.totalorder %s4417_s15, 5 }
   0x4   : > { %p176_p2 = pnand %p3887_p0, %p175_p1 }
   0x6   : > { %179 = sbr.rel (%p176_p2) target bundleno = 1009 (0x3f1), region = 36 }
   0xd   : > { %v4376_v0 = vld [vmem:[%s5698_s2] sm:$0xff]   ;;  %v4377_v1 = vld [vmem:[%s5698_s2 + $0x8] sm:$0xff]   ;;  %s3891_s21 = sshll.u32 %s3883_s16, 6  ;;  %v4378_v2 = vld [vmem:[%s5698_s2 + $0x10] ss:$0 sps:$4 sm:$0x11]  }
   0xe   : > { %4096 = vmatprep.subr.bf16.mxu0 %v4376_v0  ;;  %p215_p3 = scmp.lt.s32.totalorder %s3891_s21, 255  ;;  %vm568_vm0 = vcmask 1040384   ;;  %vm471_vm1 = vcmask 277504   ;;  %s3888_s28 = sshll.u32 %s3883_s16, 5  ;;  %vm1693_vm2 = vcmask 130048   ;;  %vm1758_vm3 = vcmask 261120  }
   0xf   : > { %4097 = vmatpush3.bf16.msra.mxu0 %v4376_v0  ;;  %v570_v3 = vsel %vm568_vm0, %v4378_v2, 0  ;;  %p208_p4 = scmp.lt.s32.totalorder %s3888_s28, 127  ;;  %s4419_s7 = smov 32   ;;  %vm1845_vm4 = vcmask 392192   ;;  %vm4424_vm5 = vmmov 0   ;;  %vm3782_vm6 = vcmask 109568  }
  0x10   : > { %4098 = vmatprep.subr.bf16.mxu0 %v4377_v1  ;;  %s5783_s21 = smov (!%p215_p3, %s3891_s21), 255  ;;  %s4420_s8 = smov 16  }
  0x11   : > { %s3892_s24 = sshll.u32 %s5783_s21, 2  ;;  %s5785_s28 = smov (!%p208_p4, %s3888_s28), 127 }
  0x12   : > { %s4471_s27 = scalar_lea.vmem %s5697_s1, %s3892_s24  ;;  %s3996_s29 = sshll.u32 %s5785_s28, 4 }
  0x13   : > { %4099 = vmatpush3.bf16.msra.mxu0 %v4377_v1  ;;  %v4379_v4 = vld [vmem:[%s4471_s27] sm:$0xff]   ;;  %v4380_v5 = vld [vmem:[%s4471_s27 + $0x8] sm:$0xff]   ;;  %v4381_v6 = vld [vmem:[%s4471_s27 + $0x10] sm:$0xff]   ;;  %s4491_s6 = scalar_lea.vmem %s5696_s0, %s3996_s29  ;;  %s4422_s9 = smov 124  }
  0x14   : > { %4358 = vmatprep.subr.msk.bf16.mxu0 %vm568_vm0, %v4378_v2  ;;  %4102 = vmatprep.mubr.msk.bf16.mxu0 %vm471_vm1, %v4379_v4  ;;  %v4382_v7 = vld [vmem:[%s4471_s27 + $0x18] sm:$0xff]   ;;  %v4383_v8 = vld [vmem:[%s4471_s27 + $0x20] sm:$0xff]   ;;  %v4384_v9 = vld [vmem:[%s4471_s27 + $0x28] sm:$0xff]   ;;  %s4423_s10 = smov 120   ;;  %s3894_s13 = sshll.u32 %s5785_s28, 2 }
  0x15   : > { %v4385_v10 = vld [vmem:[%s4471_s27 + $0x30] sm:$0xff]   ;;  %v1181_v11 = vld [vmem:[%s4491_s6] sm:$0xff]  ;;  %v1182_v12 = vld [vmem:[%s4491_s6 + $0x8] sm:$0xff]  ;;  %s5585_s17 = scalar_lea.vmem %s5700_s4, %s3894_s13 }
  0x16   : > { %v1183_v13 = vld [vmem:[%s4491_s6 + $0x10] sm:$0xff]  ;;  %v4498_v14 = vpack.c.bf16 %v1182_v12, %v1181_v11  ;;  %v1184_v15 = vld [vmem:[%s4491_s6 + $0x18] sm:$0xff]  ;;  %v1185_v16 = vld [vmem:[%s4491_s6 + $0x20] sm:$0xff] }
  0x17   : > { %4101 = vmatpush3.bf16.msra.mxu0 %v570_v3  ;;  %v1186_v17 = vld [vmem:[%s4491_s6 + $0x28] sm:$0xff]  ;;  %v4503_v18 = vpack.c.bf16 %v1184_v15, %v1183_v13  ;;  %v1187_v20 = vld [vmem:[%s4491_s6 + $0x30] sm:$0xff]  ;;  %v1188_v21 = vld [vmem:[%s4491_s6 + $0x38] sm:$0xff] }
  0x18   : > { %v4505_v19 = vpack.c.bf16 %v1186_v17, %v1185_v16  ;;  %v1189_v22 = vld [vmem:[%s4491_s6 + $0x40] sm:$0xff]  ;;  %v1597_v23 = vrot.slane %v4498_v14, 1  ;;  %v1278_v24 = vshrl.u32 %v4498_v14, 16  ;;  %v1280_v25 = vshll.u32 %v4498_v14, 16  ;;  %v1190_v26 = vld [vmem:[%s4491_s6 + $0x48] sm:$0xff]  ;;  %v4386_v27 = vld [vmem:[%s4471_s27 + $0x38] sm:$0xff]  }
  0x19   : > { %v1287_v28 = vshll.u32 %v4503_v18, 16  ;;  %v4387_v29 = vld [vmem:[%s4471_s27 + $0x40] sm:$0xff]   ;;  %v1285_v31 = vshrl.u32 %v4503_v18, 16  ;;  %v4520_v33 = vpack.c.bf16 %v1188_v21, %v1187_v20  ;;  %v1598_v34 = vrot.slane %v4503_v18, 1  ;;  %v1191_v38 = vld [vmem:[%s4491_s6 + $0x50] sm:$0xff]  ;;  %v1192_v40 = vld [vmem:[%s4491_s6 + $0x58] sm:$0xff] }
  0x1a   : > { %4103 = vmatmul.mubr.msk.bf16.vlgmr.msra.gmra.mrb[0].mxu0 %vm471_vm1, %v4380_v5  ;;  %1629 = vrot.lane.b32.xlu1 %v1597_v23, %s4419_s7  ;;  %v1282_v30 = vrot.slane %v1280_v25, 1  ;;  %v1294_v32 = vshll.u32 %v4505_v19, 16  ;;  %v4523_v36 = vpack.c.bf16 %v1190_v26, %v1189_v22  ;;  %v1292_v39 = vshrl.u32 %v4505_v19, 16  ;;  %v1193_v47 = vld [vmem:[%s4491_s6 + $0x60] sm:$0xff]  ;;  %v1194_v48 = vld [vmem:[%s4491_s6 + $0x68] sm:$0xff]  ;;  %v4389_v51 = vld [vmem:[%s4471_s27 + $0x50] sm:$0xff]  }
  0x1b   : > { %4106 = vmatprep.mubr.msk.bf16.mxu0 %vm471_vm1, %v4381_v6  ;;  %v1289_v35 = vrot.slane %v1287_v28, 1  ;;  %v1301_v43 = vshll.u32 %v4520_v33, 16  ;;  %v4532_v44 = vpack.c.bf16 %v1192_v40, %v1191_v38  ;;  %v1599_v45 = vrot.slane %v4505_v19, 1  ;;  %v4388_v49 = vld [vmem:[%s4471_s27 + $0x48] sm:$0xff]   ;;  %v1195_v59 = vld [vmem:[%s4491_s6 + $0x70] sm:$0xff]  ;;  %v1196_v60 = vld [vmem:[%s4491_s6 + $0x78] sm:$0xff] }
  0x1c   : > { %v1283_v37 = vor.u32 %v1282_v30, %v1278_v24  ;;  %v1296_v42 = vrot.slane %v1294_v32, 1  ;;  %v1308_v46 = vshll.u32 %v4523_v36, 16  ;;  %v1600_v50 = vrot.slane %v4520_v33, 1  ;;  %v1197_v3 = vld [vmem:[%s4491_s6 + $0x80] sm:$0xff]  ;;  %v1198_v4 = vld [vmem:[%s4491_s6 + $0x88] sm:$0xff]  ;;  %v4390_v5 = vld [vmem:[%s4471_s27 + $0x58] sm:$0xff]  }
  0x1d   : > { %v1290_v41 = vor.u32 %v1289_v35, %v1285_v31  ;;  %v1299_v53 = vshrl.u32 %v4520_v33, 16  ;;  %v1303_v54 = vrot.slane %v1301_v43, 1  ;;  %v1315_v55 = vshll.u32 %v4532_v44, 16  ;;  %v4391_v6 = vld [vmem:[%s4471_s27 + $0x60] sm:$0xff]   ;;  %v1200_v11 = vld [vmem:[%s4491_s6 + $0x98] sm:$0xff]  ;;  %v1202_v25 = vld [vmem:[%s4491_s6 + $0xa8] sm:$0xff] }
  0x1e   : > { %1501 = vrot.lane.b32.xlu0 %v1283_v37, %s4420_s8  ;;  %1631 = vrot.lane.b32.xlu1 %v1598_v34, %s4419_s7  ;;  %v1297_v52 = vor.u32 %v1296_v42, %v1292_v39  ;;  %v1306_v56 = vshrl.u32 %v4523_v36, 16  ;;  %v1310_v57 = vrot.slane %v1308_v46, 1  ;;  %v4547_v58 = vpack.c.bf16 %v1194_v48, %v1193_v47  ;;  %v1201_v24 = vld [vmem:[%s4491_s6 + $0xa0] sm:$0xff]  ;;  %v4392_v26 = vld [vmem:[%s4471_s27 + $0x68] sm:$0xff]  }
  0x1f   : > { %v1304_v61 = vor.u32 %v1303_v54, %v1299_v53  ;;  %v1313_v62 = vshrl.u32 %v4532_v44, 16  ;;  %v1317_v63 = vrot.slane %v1315_v55, 1  ;;  %v4555_v0 = vpack.c.bf16 %v1196_v60, %v1195_v59  ;;  %v1203_v35 = vld [vmem:[%s4491_s6 + $0xb0] sm:$0xff]  ;;  %v1204_v37 = vld [vmem:[%s4491_s6 + $0xb8] sm:$0xff]  ;;  %v1206_v46 = vld [vmem:[%s4491_s6 + $0xc8] sm:$0xff] }
  0x20   : > { %v1311_v1 = vor.u32 %v1310_v57, %v1306_v56  ;;  %v1322_v2 = vshll.u32 %v4547_v58, 16  ;;  %v1320_v12 = vshrl.u32 %v4547_v58, 16  ;;  %v4570_v15 = vpack.c.bf16 %v1198_v4, %v1197_v3  ;;  %v4394_v47 = vld [vmem:[%s4471_s27 + $0x78] sm:$0xff]   ;;  %v4395_v48 = vld [vmem:[%s4471_s27 + $0x80] sm:$0xff]  }
  0x21   : > { %v1602_v16 = vrot.slane %v4532_v44, 1  ;;  %v1327_v17 = vshrl.u32 %v4555_v0, 16  ;;  %v1603_v30 = vrot.slane %v4547_v58, 1  ;;  %v4590_v34 = vpack.c.bf16 %v1202_v25, %v1201_v24  ;;  %v4400_v24 = vld [vmem:[%s4471_s27 + $0xa8] sm:$0xff]   ;;  %v4401_v25 = vld [vmem:[%s4471_s27 + $0xb0] sm:$0xff]  }
  0x22   : > { %4107 = vmatmul.mubr.msk.bf16.gmra.mrb[4].mxu0 %vm471_vm1, %v4382_v7  ;;  %1503 = vrot.lane.b32.xlu0 %v1290_v41, %s4420_s8  ;;  %v1601_v7 = vrot.slane %v4523_v36, 1  ;;  %v1324_v13 = vrot.slane %v1322_v2, 1  ;;  %v1336_v23 = vshll.u32 %v4570_v15, 16  ;;  %v1334_v31 = vshrl.u32 %v4570_v15, 16 }
  0x23   : > { %4110 = vmatprep.mubr.msk.bf16.mxu0 %vm471_vm1, %v4383_v8  ;;  %1633 = vrot.lane.b32.xlu1 %v1599_v45, %s4419_s7  ;;  %v1318_v8 = vor.u32 %v1317_v63, %v1313_v62  ;;  %5720 = vst [vmem:[#allocation3_spill] sm:$0xff] %v4590_v34  ;;  %v1604_v38 = vrot.slane %v4555_v0, 1  ;;  %v4599_v41 = vpack.c.bf16 %v1204_v37, %v1203_v35  ;;  %v1350_v43 = vshll.u32 %v4590_v34, 16  ;;  %v1205_v45 = vld [vmem:[%s4491_s6 + $0xc0] sm:$0xff]  ;;  %v1210_v62 = vld [vmem:[%s4491_s6 + $0xe8] sm:$0xff] }
  0x24   : > { %v1325_v22 = vor.u32 %v1324_v13, %v1320_v12  ;;  %v1338_v32 = vrot.slane %v1336_v23, 1  ;;  %v4612_v54 = vpack.c.bf16 %v1206_v46, %v1205_v45  ;;  %v4396_v63 = vld [vmem:[%s4471_s27 + $0x88] sm:$0xff]   ;;  %v1607_v3 = vrot.slane %v4590_v34, 1  ;;  %v4410_v45 = vld [vmem:[%s4471_s27 + $0xf8] sm:$0xff]  }
  0x25   : > { %5721 = vst [vmem:[#allocation4_spill] sm:$0xff] %v4599_v41  ;;  %v1352_v53 = vrot.slane %v1350_v43, 1  ;;  %v1355_v56 = vshrl.u32 %v4599_v41, 16  ;;  %v4404_v37 = vld [vmem:[%s4471_s27 + $0xc8] sm:$0xff]   ;;  %v4409_v43 = vld [vmem:[%s4471_s27 + $0xf0] sm:$0xff]  }
  0x26   : > { %1505 = vrot.lane.b32.xlu0 %v1297_v52, %s4420_s8  ;;  %v1339_v42 = vor.u32 %v1338_v32, %v1334_v31  ;;  %v1348_v52 = vshrl.u32 %v4590_v34, 16  ;;  %5722 = vst [vmem:[#allocation5_spill] sm:$0xff] %v4612_v54  ;;  %v1364_v60 = vshll.u32 %v4612_v54, 16  ;;  %v1362_v4 = vshrl.u32 %v4612_v54, 16  ;;  %v4402_v31 = vld [vmem:[%s4471_s27 + $0xb8] sm:$0xff]   ;;  %v4403_v32 = vld [vmem:[%s4471_s27 + $0xc0] sm:$0xff]  }
  0x27   : > { %1635 = vrot.lane.b32.xlu1 %v1600_v50, %s4419_s7  ;;  %v1357_v50 = vshll.u32 %v4599_v41, 16  ;;  %v1609_v12 = vrot.slane %v4612_v54, 1 }
  0x28   : > { %v1353_v59 = vor.u32 %v1352_v53, %v1348_v52 }
  0x29   : > { %v1359_v57 = vrot.slane %v1357_v50, 1  ;;  %v5701_v50 = vmov 0.0  }
  0x2a   : > { %4111 = vmatmul.mubr.msk.bf16.gmra.mrb[8].mxu0 %vm471_vm1, %v4384_v9  ;;  %1507 = vrot.lane.b32.xlu0 %v1304_v61, %s4420_s8  ;;  %v1329_v9 = vshll.u32 %v4555_v0, 16  ;;  %v1209_v61 = vld [vmem:[%s4491_s6 + $0xe0] sm:$0xff] }
  0x2b   : > { %4114 = vmatprep.mubr.msk.bf16.mxu0 %vm471_vm1, %v4385_v10  ;;  %v1199_v10 = vld [vmem:[%s4491_s6 + $0x90] sm:$0xff]  ;;  %1509 = vrot.lane.b32.xlu1 %v1311_v1, %s4420_s8  ;;  %v1360_v2 = vor.u32 %v1359_v57, %v1355_v56 }
  0x2c   : > { %v1331_v20 = vrot.slane %v1329_v9, 1  ;;  %v4577_v21 = vpack.c.bf16 %v1200_v11, %v1199_v10  ;;  %v4397_v1 = vld [vmem:[%s4471_s27 + $0x90] sm:$0xff]   ;;  %v4398_v10 = vld [vmem:[%s4471_s27 + $0x98] sm:$0xff]   ;;  %v4399_v11 = vld [vmem:[%s4471_s27 + $0xa0] sm:$0xff]   ;;  %4166 = vmatprep.subr.bf16.mxu1 %v5701_v50  ;;  %4268 = vmatprep.subr.bf16.mxu0 %v5701_v50 }
  0x2e   : > { %1511 = vrot.lane.b32.xlu0 %v1318_v8, %s4420_s8  ;;  %5719 = vst [vmem:[#allocation2_spill] sm:$0xff] %v4577_v21  ;;  %v1332_v28 = vor.u32 %v1331_v20, %v1327_v17  ;;  %v1341_v39 = vshrl.u32 %v4577_v21, 16  ;;  %v1606_v55 = vrot.slane %v4577_v21, 1  ;;  %v1207_v20 = vld [vmem:[%s4491_s6 + $0xd0] sm:$0xff] }
  0x2f   : > { %1637 = vrot.lane.b32.xlu1 %v1601_v7, %s4419_s7  ;;  %v1608_v7 = vrot.slane %v4599_v41, 1 }
  0x32   : > { %4115 = vmatmul.mubr.msk.bf16.gmra.mrb[12].mxu0 %vm471_vm1, %v4386_v27  ;;  %v4393_v27 = vld [vmem:[%s4471_s27 + $0x70] sm:$0xff]   ;;  %1639 = vrot.lane.b32.xlu0 %v1602_v16, %s4419_s7 }
  0x33   : > { %4118 = vmatprep.mubr.msk.bf16.mxu0 %vm471_vm1, %v4387_v29  ;;  %v1343_v29 = vshll.u32 %v4577_v21, 16  ;;  %1513 = vrot.lane.b32.xlu1 %v1325_v22, %s4420_s8  ;;  %v1208_v22 = vld [vmem:[%s4491_s6 + $0xd8] sm:$0xff] }
  0x34   : > { %v4648_v23 = vpack.c.bf16 %v1208_v22, %v1207_v20 }
  0x35   : > { %v1345_v40 = vrot.slane %v1343_v29, 1 }
  0x36   : > { %1515 = vrot.lane.b32.xlu0 %v1332_v28, %s4420_s8  ;;  %5724 = vst [vmem:[#allocation7_spill] sm:$0xff] %v4648_v23  ;;  %v1610_v35 = vrot.slane %v4648_v23, 1 }
  0x37   : > { %1641 = vrot.lane.b32.xlu1 %v1603_v30, %s4419_s7 }
  0x3a   : > { %4119 = vmatmul.mubr.msk.bf16.gmra.mrb[16].mxu0 %vm471_vm1, %v4388_v49  ;;  %1643 = vrot.lane.b32.xlu0 %v1604_v38, %s4419_s7  ;;  %v1346_v49 = vor.u32 %v1345_v40, %v1341_v39  ;;  %v4405_v38 = vld [vmem:[%s4471_s27 + $0xd0] sm:$0xff]   ;;  %v4406_v39 = vld [vmem:[%s4471_s27 + $0xd8] sm:$0xff]   ;;  %v4407_v40 = vld [vmem:[%s4471_s27 + $0xe0] sm:$0xff]  }
  0x3b   : > { %4122 = vmatprep.mubr.msk.bf16.mxu0 %vm471_vm1, %v4389_v51  ;;  %1517 = vrot.lane.b32.xlu1 %v1339_v42, %s4420_s8  ;;  %v1605_v51 = vrot.slane %v4570_v15, 1  ;;  %v4408_v42 = vld [vmem:[%s4471_s27 + $0xe8] sm:$0xff]  }
  0x3e   : > { %1519 = vrot.lane.b32.xlu0 %v1346_v49, %s4420_s8 }
  0x3f   : > { %1645 = vrot.lane.b32.xlu1 %v1605_v51, %s4419_s7 }
  0x42   : > { %4123 = vmatmul.mubr.msk.bf16.gmra.mrb[20].mxu0 %vm471_vm1, %v4390_v5  ;;  %1647 = vrot.lane.b32.xlu0 %v1606_v55, %s4419_s7  ;;  %v1366_v5 = vrot.slane %v1364_v60, 1 }
  0x43   : > { %4126 = vmatprep.mubr.msk.bf16.mxu0 %vm471_vm1, %v4391_v6  ;;  %1521 = vrot.lane.b32.xlu1 %v1353_v59, %s4420_s8  ;;  %v4629_v6 = vpack.c.bf16 %v1210_v62, %v1209_v61 }
  0x44   : > { %v1367_v8 = vor.u32 %v1366_v5, %v1362_v4 }
  0x45   : > { %5723 = vst [vmem:[#allocation6_spill] sm:$0xff] %v4629_v6  ;;  %v1378_v9 = vshll.u32 %v4629_v6, 16  ;;  %v1376_v13 = vshrl.u32 %v4629_v6, 16  ;;  %v1611_v30 = vrot.slane %v4629_v6, 1 }
  0x46   : > { %1523 = vrot.lane.b32.xlu0 %v1360_v2, %s4420_s8 }
  0x47   : > { %1649 = vrot.lane.b32.xlu1 %v1607_v3, %s4419_s7  ;;  %v1380_v16 = vrot.slane %v1378_v9, 1 }
  0x49   : > { %v1381_v17 = vor.u32 %v1380_v16, %v1376_v13 }
  0x4a   : > { %4127 = vmatmul.mubr.msk.bf16.gmra.mrb[24].mxu0 %vm471_vm1, %v4392_v26  ;;  %1651 = vrot.lane.b32.xlu0 %v1608_v7, %s4419_s7  ;;  %v1371_v26 = vshll.u32 %v4648_v23, 16 }
  0x4b   : > { %4130 = vmatprep.mubr.msk.bf16.mxu0 %vm471_vm1, %v4393_v27  ;;  %1525 = vrot.lane.b32.xlu1 %v1367_v8, %s4420_s8  ;;  %v1369_v27 = vshrl.u32 %v4648_v23, 16 }
  0x4c   : > { %v1373_v28 = vrot.slane %v1371_v26, 1 }
  0x4e   : > { %v1374_v29 = vor.u32 %v1373_v28, %v1369_v27 }
  0x4f   : > { %1653 = vrot.lane.b32.xlu1 %v1609_v12, %s4419_s7 }
  0x50   : > { %1527 = vrot.lane.b32.xlu0 %v1374_v29, %s4420_s8 }
  0x52   : > { %4131 = vmatmul.mubr.msk.bf16.gmra.mrb[28].mxu0 %vm471_vm1, %v4394_v47 }
  0x53   : > { %4134 = vmatprep.mubr.msk.bf16.mxu0 %vm471_vm1, %v4395_v48  ;;  %1529 = vrot.lane.b32.xlu1 %v1381_v17, %s4420_s8 }
  0x54   : > { %1655 = vrot.lane.b32.xlu0 %v1610_v35, %s4419_s7 }
  0x57   : > { %1657 = vrot.lane.b32.xlu1 %v1611_v30, %s4419_s7 }
  0x5a   : > { %4135 = vmatmul.mubr.msk.bf16.gmra.mrb[32].mxu0 %vm471_vm1, %v4396_v63 }
  0x5b   : > { %4138 = vmatprep.mubr.msk.bf16.mxu0 %vm471_vm1, %v4397_v1 }
  0x62   : > { %4139 = vmatmul.mubr.msk.bf16.gmra.mrb[36].mxu0 %vm471_vm1, %v4398_v10 }
  0x63   : > { %4142 = vmatprep.mubr.msk.bf16.mxu0 %vm471_vm1, %v4399_v11 }
  0x6a   : > { %4143 = vmatmul.mubr.msk.bf16.gmra.mrb[40].mxu0 %vm471_vm1, %v4400_v24 }
  0x6b   : > { %4146 = vmatprep.mubr.msk.bf16.mxu0 %vm471_vm1, %v4401_v25 }
  0x72   : > { %4147 = vmatmul.mubr.msk.bf16.gmra.mrb[44].mxu0 %vm471_vm1, %v4402_v31 }
  0x73   : > { %4150 = vmatprep.mubr.msk.bf16.mxu0 %vm471_vm1, %v4403_v32 }
  0x7a   : > { %4151 = vmatmul.mubr.msk.bf16.gmra.mrb[48].mxu0 %vm471_vm1, %v4404_v37 }
  0x7b   : > { %4154 = vmatprep.mubr.msk.bf16.mxu0 %vm471_vm1, %v4405_v38 }
  0x82   : > { %4155 = vmatmul.mubr.msk.bf16.gmra.mrb[52].mxu0 %vm471_vm1, %v4406_v39 }
  0x83   : > { %4158 = vmatprep.mubr.msk.bf16.mxu0 %vm471_vm1, %v4407_v40 }
  0x8a   : > { %4159 = vmatmul.mubr.msk.bf16.gmra.mrb[56].mxu0 %vm471_vm1, %v4408_v42 }
  0x8b   : > { %4162 = vmatprep.mubr.msk.bf16.mxu0 %vm471_vm1, %v4409_v43 }
  0x8c   : > { %v1630_v47 = vpop.permute.xlu1 %1629 }
  0x90   : > { %v1502_v46 = vpop.permute.xlu0 %1501  ;;  %v4731_v43 = vpop.permute.xlu1 %1631 }
  0x91   : > { %v1695_v48 = vsel %vm1693_vm2, %v4498_v14, %v1502_v46 }
  0x92   : > { %4163 = vmatmul.mubr.msk.bf16.gmra.mrb[60].mxu0 %vm471_vm1, %v4410_v45  ;;  %v1760_v49 = vsel %vm1758_vm3, %v1695_v48, %v1630_v47 }
  0x93   : > { %v1849_v51 = vsel %vm1845_vm4, %v1760_v49, 0 }
  0x94   : > { %4167 = vmatpush3.bf16.xpose.msra.mxu1 %v1849_v51 }
  0x95   : > { %4172 = vmatprep.subr.bf16.mxu1 %v5701_v50 }
  0xed   : > { %v4104_v52 = vpop.f32.mrb[0].mxu0 }
  0xee   : > { %v606_v53 = vpop.f32.mrb[1].mxu0  ;;  %v863_v56 = vmax.f32 %v4104_v52, 0.0 }
  0xef   : > { %v4105_v55 = vpop.f32.mrb[2].mxu0  ;;  %v861_v59 = vmax.f32 %v606_v53, 0.0 }
  0xf0   : > { %v864_v57 = vmax.f32 %v4105_v55, 0.0  ;;  %v609_v14 = vpop.f32.mrb[3].mxu0  ;;  %v4741_v55 = vpop.permute.xlu1 %1633 }
  0xf1   : > { %v862_v60 = vmax.f32 %v609_v14, 0.0 }
  0xf2   : > { %v4687_v61 = vpack.c.bf16 %v864_v57, %v863_v56 }
  0xf3   : > { %v4689_v62 = vpack.c.bf16 %v862_v60, %v861_v59 }
  0xf4   : > { %991 = vrot.lane.b32.xlu1 %v4687_v61, %s4422_s9 }
  0xf5   : > { %v4108_v63 = vpop.f32.mrb[4].mxu0  ;;  %989 = vrot.lane.b32.xlu0 %v4689_v62, %s4422_s9 }
  0xf6   : > { %v622_v1 = vpop.f32.mrb[5].mxu0  ;;  %v867_v3 = vmax.f32 %v4108_v63, 0.0 }
  0xf7   : > { %v4109_v2 = vpop.f32.mrb[6].mxu0  ;;  %v865_v7 = vmax.f32 %v622_v1, 0.0 }
  0xf8   : > { %v868_v4 = vmax.f32 %v4109_v2, 0.0  ;;  %v625_v5 = vpop.f32.mrb[7].mxu0  ;;  %1087 = vrot.lane.b32.xlu1 %v4687_v61, %s4423_s10 }
  0xf9   : > { %v866_v8 = vmax.f32 %v625_v5, 0.0  ;;  %1085 = vrot.lane.b32.xlu0 %v4689_v62, %s4423_s10 }
  0xfa   : > { %v4699_v9 = vpack.c.bf16 %v868_v4, %v867_v3  ;;  %v4753_v4 = vpop.permute.xlu1 %1635 }
  0xfb   : > { %v4701_v10 = vpack.c.bf16 %v866_v8, %v865_v7  ;;  %v4757_v7 = vpop.permute.xlu0 %1503 }
  0xfc   : > { %1091 = vrot.lane.b32.xlu1 %v4699_v9, %s4423_s10 }
  0xfd   : > { %v4112_v11 = vpop.f32.mrb[8].mxu0  ;;  %995 = vrot.lane.b32.xlu0 %v4699_v9, %s4422_s9 }
  0xfe   : > { %v638_v12 = vpop.f32.mrb[9].mxu0  ;;  %v871_v16 = vmax.f32 %v4112_v11, 0.0 }
  0xff   : > { %v4113_v13 = vpop.f32.mrb[10].mxu0  ;;  %v869_v22 = vmax.f32 %v638_v12, 0.0 }
 0x100   : > { %v872_v17 = vmax.f32 %v4113_v13, 0.0  ;;  %v641_v20 = vpop.f32.mrb[11].mxu0  ;;  %1089 = vrot.lane.b32.xlu1 %v4701_v10, %s4423_s10 }
 0x101   : > { %v870_v24 = vmax.f32 %v641_v20, 0.0  ;;  %993 = vrot.lane.b32.xlu0 %v4701_v10, %s4422_s9  ;;  %v4763_v20 = vpop.permute.xlu1 %1509 }
 0x102   : > { %v4711_v25 = vpack.c.bf16 %v872_v17, %v871_v16 }
 0x103   : > { %v4713_v26 = vpack.c.bf16 %v870_v24, %v869_v22 }
 0x104   : > { %1095 = vrot.lane.b32.xlu1 %v4711_v25, %s4423_s10 }
 0x105   : > { %v4116_v27 = vpop.f32.mrb[12].mxu0  ;;  %999 = vrot.lane.b32.xlu0 %v4711_v25, %s4422_s9 }
 0x106   : > { %v654_v28 = vpop.f32.mrb[13].mxu0  ;;  %v875_v30 = vmax.f32 %v4116_v27, 0.0  ;;  %v4769_v27 = vpop.permute.xlu0 %1505 }
 0x107   : > { %v4117_v29 = vpop.f32.mrb[14].mxu0  ;;  %v873_v35 = vmax.f32 %v654_v28, 0.0 }
 0x108   : > { %v876_v31 = vmax.f32 %v4117_v29, 0.0  ;;  %v657_v32 = vpop.f32.mrb[15].mxu0  ;;  %1093 = vrot.lane.b32.xlu1 %v4713_v26, %s4423_s10 }
 0x109   : > { %v874_v37 = vmax.f32 %v657_v32, 0.0  ;;  %997 = vrot.lane.b32.xlu0 %v4713_v26, %s4422_s9  ;;  %v4779_v32 = vpop.permute.xlu1 %1637 }
 0x10a   : > { %v4723_v38 = vpack.c.bf16 %v876_v31, %v875_v30 }
 0x10b   : > { %v4725_v39 = vpack.c.bf16 %v874_v37, %v873_v35  ;;  %v4781_v37 = vpop.permute.xlu0 %1507 }
 0x10c   : > { %1099 = vrot.lane.b32.xlu1 %v4723_v38, %s4423_s10 }
 0x10d   : > { %v4120_v40 = vpop.f32.mrb[16].mxu0  ;;  %1003 = vrot.lane.b32.xlu0 %v4723_v38, %s4422_s9 }
 0x10e   : > { %v670_v42 = vpop.f32.mrb[17].mxu0  ;;  %v879_v46 = vmax.f32 %v4120_v40, 0.0 }
 0x10f   : > { %v4121_v45 = vpop.f32.mrb[18].mxu0  ;;  %v877_v49 = vmax.f32 %v670_v42, 0.0 }
 0x110   : > { %v880_v47 = vmax.f32 %v4121_v45, 0.0  ;;  %v673_v48 = vpop.f32.mrb[19].mxu0  ;;  %1097 = vrot.lane.b32.xlu1 %v4725_v39, %s4423_s10 }
 0x111   : > { %v878_v51 = vmax.f32 %v673_v48, 0.0  ;;  %1001 = vrot.lane.b32.xlu0 %v4725_v39, %s4422_s9 }
 0x112   : > { %v4737_v52 = vpack.c.bf16 %v880_v47, %v879_v46 }
 0x113   : > { %v4739_v53 = vpack.c.bf16 %v878_v51, %v877_v49  ;;  %v4791_v51 = vpop.permute.xlu0 %1511 }
 0x115   : > { %5725 = vst [vmem:[#allocation8_spill] sm:$0xff] %v4739_v53  ;;  %v4124_v56 = vpop.f32.mrb[20].mxu0  ;;  %1005 = vrot.lane.b32.xlu1 %v4739_v53, %s4422_s9  ;;  %1007 = vrot.lane.b32.xlu0 %v4737_v52, %s4422_s9 }
 0x116   : > { %v686_v57 = vpop.f32.mrb[21].mxu0  ;;  %v883_v59 = vmax.f32 %v4124_v56, 0.0  ;;  %v4793_v56 = vpop.permute.xlu1 %1513 }
 0x117   : > { %v4125_v14 = vpop.f32.mrb[22].mxu0  ;;  %v881_v1 = vmax.f32 %v686_v57, 0.0 }
 0x118   : > { %v884_v60 = vmax.f32 %v4125_v14, 0.0  ;;  %v689_v63 = vpop.f32.mrb[23].mxu0 }
 0x119   : > { %v882_v2 = vmax.f32 %v689_v63, 0.0  ;;  %1101 = vrot.lane.b32.xlu1 %v4739_v53, %s4423_s10  ;;  %1103 = vrot.lane.b32.xlu0 %v4737_v52, %s4423_s10 }
 0x11a   : > { %v4751_v3 = vpack.c.bf16 %v884_v60, %v883_v59 }
 0x11b   : > { %v4755_v5 = vpack.c.bf16 %v882_v2, %v881_v1 }
 0x11d   : > { %5726 = vst [vmem:[#allocation9_spill] sm:$0xff] %v4755_v5  ;;  %v4128_v8 = vpop.f32.mrb[24].mxu0  ;;  %1009 = vrot.lane.b32.xlu1 %v4755_v5, %s4422_s9  ;;  %1011 = vrot.lane.b32.xlu0 %v4751_v3, %s4422_s9 }
 0x11e   : > { %v702_v11 = vpop.f32.mrb[25].mxu0  ;;  %v887_v13 = vmax.f32 %v4128_v8, 0.0 }
 0x11f   : > { %v4129_v12 = vpop.f32.mrb[26].mxu0  ;;  %v885_v22 = vmax.f32 %v702_v11, 0.0  ;;  %v4803_v11 = vpop.permute.xlu0 %1639 }
 0x120   : > { %v888_v16 = vmax.f32 %v4129_v12, 0.0  ;;  %v705_v17 = vpop.f32.mrb[27].mxu0 }
 0x121   : > { %v886_v24 = vmax.f32 %v705_v17, 0.0  ;;  %1105 = vrot.lane.b32.xlu1 %v4755_v5, %s4423_s10  ;;  %1107 = vrot.lane.b32.xlu0 %v4751_v3, %s4423_s10 }
 0x122   : > { %v4771_v28 = vpack.c.bf16 %v888_v16, %v887_v13  ;;  %v4807_v13 = vpop.permute.xlu1 %1641 }
 0x123   : > { %v4773_v29 = vpack.c.bf16 %v886_v24, %v885_v22 }
 0x125   : > { %5727 = vst [vmem:[#allocation10_spill] sm:$0xff] %v4773_v29  ;;  %v4132_v30 = vpop.f32.mrb[28].mxu0  ;;  %1013 = vrot.lane.b32.xlu1 %v4773_v29, %s4422_s9  ;;  %1015 = vrot.lane.b32.xlu0 %v4771_v28, %s4422_s9 }
 0x126   : > { %v718_v31 = vpop.f32.mrb[29].mxu0  ;;  %v891_v40 = vmax.f32 %v4132_v30, 0.0 }
 0x127   : > { %v4133_v35 = vpop.f32.mrb[30].mxu0  ;;  %v889_v46 = vmax.f32 %v718_v31, 0.0  ;;  %v4813_v31 = vpop.permute.xlu0 %1515 }
 0x128   : > { %v892_v42 = vmax.f32 %v4133_v35, 0.0  ;;  %v721_v45 = vpop.f32.mrb[31].mxu0 }
 0x129   : > { %v890_v47 = vmax.f32 %v721_v45, 0.0  ;;  %1109 = vrot.lane.b32.xlu1 %v4773_v29, %s4423_s10  ;;  %1111 = vrot.lane.b32.xlu0 %v4771_v28, %s4423_s10 }
 0x12a   : > { %v4787_v48 = vpack.c.bf16 %v892_v42, %v891_v40  ;;  %v4815_v42 = vpop.permute.xlu1 %1517 }
 0x12b   : > { %v4789_v49 = vpack.c.bf16 %v890_v47, %v889_v46 }
 0x12d   : > { %5728 = vst [vmem:[#allocation11_spill] sm:$0xff] %v4789_v49  ;;  %v4136_v57 = vpop.f32.mrb[32].mxu0  ;;  %1017 = vrot.lane.b32.xlu1 %v4789_v49, %s4422_s9  ;;  %1019 = vrot.lane.b32.xlu0 %v4787_v48, %s4422_s9 }
 0x12e   : > { %v895_v14 = vmax.f32 %v4136_v57, 0.0  ;;  %v734_v59 = vpop.f32.mrb[33].mxu0 }
 0x12f   : > { %v4137_v60 = vpop.f32.mrb[34].mxu0  ;;  %v893_v2 = vmax.f32 %v734_v59, 0.0  ;;  %v4827_v59 = vpop.permute.xlu0 %1643 }
 0x130   : > { %v896_v63 = vmax.f32 %v4137_v60, 0.0  ;;  %v737_v1 = vpop.f32.mrb[35].mxu0 }
 0x131   : > { %v894_v8 = vmax.f32 %v737_v1, 0.0  ;;  %1113 = vrot.lane.b32.xlu1 %v4789_v49, %s4423_s10  ;;  %1115 = vrot.lane.b32.xlu0 %v4787_v48, %s4423_s10  ;;  %v4829_v1 = vpop.permute.xlu1 %1645 }
 0x132   : > { %v4805_v12 = vpack.c.bf16 %v896_v63, %v895_v14 }
 0x133   : > { %v4809_v16 = vpack.c.bf16 %v894_v8, %v893_v2 }
 0x135   : > { %5729 = vst [vmem:[#allocation12_spill] sm:$0xff] %v4809_v16  ;;  %v4140_v17 = vpop.f32.mrb[36].mxu0  ;;  %1023 = vrot.lane.b32.xlu1 %v4805_v12, %s4422_s9 }
 0x136   : > { %v899_v22 = vmax.f32 %v4140_v17, 0.0  ;;  %v750_v24 = vpop.f32.mrb[37].mxu0 }
 0x137   : > { %v4141_v30 = vpop.f32.mrb[38].mxu0  ;;  %v897_v45 = vmax.f32 %v750_v24, 0.0 }
 0x138   : > { %v900_v35 = vmax.f32 %v4141_v30, 0.0  ;;  %v753_v40 = vpop.f32.mrb[39].mxu0 }
 0x139   : > { %v898_v46 = vmax.f32 %v753_v40, 0.0  ;;  %1119 = vrot.lane.b32.xlu1 %v4805_v12, %s4423_s10  ;;  %v4839_v40 = vpop.permute.xlu0 %1519 }
 0x13a   : > { %v4819_v47 = vpack.c.bf16 %v900_v35, %v899_v22  ;;  %5732 = vst [vmem:[#allocation15_spill] sm:$0xff] %v4839_v40 }
 0x13b   : > { %v4821_v57 = vpack.c.bf16 %v898_v46, %v897_v45  ;;  %v4843_v45 = vpop.permute.xlu1 %1521 }
 0x13c   : > { %5730 = vst [vmem:[#allocation13_spill] sm:$0xff] %v4819_v47  ;;  %1027 = vrot.lane.b32.xlu0 %v4819_v47, %s4422_s9  ;;  %5733 = vst [vmem:[#allocation16_spill] sm:$0xff] %v4843_v45 }
 0x13d   : > { %v4144_v14 = vpop.f32.mrb[40].mxu0  ;;  %1021 = vrot.lane.b32.xlu1 %v4809_v16, %s4422_s9 }
 0x13e   : > { %v903_v60 = vmax.f32 %v4144_v14, 0.0  ;;  %v766_v63 = vpop.f32.mrb[41].mxu0 }
 0x13f   : > { %v4145_v2 = vpop.f32.mrb[42].mxu0  ;;  %v901_v22 = vmax.f32 %v766_v63, 0.0  ;;  %v4853_v50 = vpop.permute.xlu1 %1649 }
 0x140   : > { %v904_v8 = vmax.f32 %v4145_v2, 0.0  ;;  %v769_v17 = vpop.f32.mrb[43].mxu0  ;;  %1123 = vrot.lane.b32.xlu0 %v4819_v47, %s4423_s10  ;;  %5735 = vst [vmem:[#allocation18_spill] sm:$0xff] %v4853_v50 }
 0x141   : > { %v902_v24 = vmax.f32 %v769_v17, 0.0  ;;  %1117 = vrot.lane.b32.xlu1 %v4809_v16, %s4423_s10 }
 0x142   : > { %v4835_v30 = vpack.c.bf16 %v904_v8, %v903_v60 }
 0x143   : > { %v4837_v35 = vpack.c.bf16 %v902_v24, %v901_v22  ;;  %v4851_v22 = vpop.permute.xlu0 %1647 }
 0x144   : > { %1025 = vrot.lane.b32.xlu0 %v4821_v57, %s4422_s9  ;;  %5734 = vst [vmem:[#allocation17_spill] sm:$0xff] %v4851_v22 }
 0x145   : > { %5731 = vst [vmem:[#allocation14_spill] sm:$0xff] %v4837_v35  ;;  %1031 = vrot.lane.b32.xlu1 %v4835_v30, %s4422_s9  ;;  %v4148_v46 = vpop.f32.mrb[44].mxu0 }
 0x146   : > { %v907_v14 = vmax.f32 %v4148_v46, 0.0  ;;  %v782_v63 = vpop.f32.mrb[45].mxu0  ;;  %v5738_v46 = vmov 0.0  }
 0x147   : > { %v905_v2 = vmax.f32 %v782_v63, 0.0  ;;  %v4149_v17 = vpop.f32.mrb[46].mxu0  ;;  %4168 = vmatprep.mubr.msk.bf16.mxu1 %vm4424_vm5, %v5738_v46  ;;  %4270 = vmatprep.mubr.msk.bf16.mxu0 %vm4424_vm5, %v5738_v46 }
 0x148   : > { %1121 = vrot.lane.b32.xlu0 %v4821_v57, %s4423_s10  ;;  %v908_v60 = vmax.f32 %v4149_v17, 0.0  ;;  %v785_v8 = vpop.f32.mrb[47].mxu0 }
 0x149   : > { %1127 = vrot.lane.b32.xlu1 %v4835_v30, %s4423_s10  ;;  %v906_v24 = vmax.f32 %v785_v8, 0.0  ;;  %v4865_v8 = vpop.permute.xlu0 %1523 }
 0x14a   : > { %v4855_v6 = vpack.c.bf16 %v908_v60, %v907_v14  ;;  %5739 = vst [vmem:[#allocation21_spill] sm:$0xff] %v4865_v8  ;;  %v4867_v60 = vpop.permute.xlu1 %1525 }
 0x14b   : > { %v4857_v23 = vpack.c.bf16 %v906_v24, %v905_v2  ;;  %5740 = vst [vmem:[#allocation22_spill] sm:$0xff] %v4867_v60 }
 0x14c   : > { %5736 = vst [vmem:[#allocation19_spill] sm:$0xff] %v4855_v6 }
 0x14d   : > { %5737 = vst [vmem:[#allocation20_spill] sm:$0xff] %v4857_v23  ;;  %1029 = vrot.lane.b32.xlu1 %v4837_v35, %s4422_s9  ;;  %v4152_v63 = vpop.f32.mrb[48].mxu0  ;;  %v4875_v22 = vpop.permute.xlu0 %1651 }
 0x14e   : > { %v911_v17 = vmax.f32 %v4152_v63, 0.0  ;;  %v798_v54 = vpop.f32.mrb[49].mxu0  ;;  %5742 = vst [vmem:[#allocation24_spill] sm:$0xff] %v4875_v22  ;;  %v4877_v21 = vpop.permute.xlu1 %1653 }
 0x14f   : > { %v909_v41 = vmax.f32 %v798_v54, 0.0  ;;  %v4153_v14 = vpop.f32.mrb[50].mxu0  ;;  %5743 = vst [vmem:[#allocation25_spill] sm:$0xff] %v4877_v21 }
 0x150   : > { %v912_v2 = vmax.f32 %v4153_v14, 0.0  ;;  %v801_v24 = vpop.f32.mrb[51].mxu0 }
 0x151   : > { %1125 = vrot.lane.b32.xlu1 %v4837_v35, %s4423_s10  ;;  %v910_v50 = vmax.f32 %v801_v24, 0.0  ;;  %v4881_v35 = vpop.permute.xlu0 %1527 }
 0x152   : > { %v4871_v34 = vpack.c.bf16 %v912_v2, %v911_v17  ;;  %5744 = vst [vmem:[#allocation26_spill] sm:$0xff] %v4881_v35 }
 0x153   : > { %v4873_v45 = vpack.c.bf16 %v910_v50, %v909_v41  ;;  %v4885_v41 = vpop.permute.xlu1 %1529 }
 0x154   : > { %5741 = vst [vmem:[#allocation23_spill] sm:$0xff] %v4871_v34  ;;  %5745 = vst [vmem:[#allocation27_spill] sm:$0xff] %v4885_v41 }
 0x155   : > { %v4156_v63 = vpop.f32.mrb[52].mxu0 }
 0x156   : > { %v915_v8 = vmax.f32 %v4156_v63, 0.0  ;;  %v814_v54 = vpop.f32.mrb[53].mxu0 }
 0x157   : > { %v913_v40 = vmax.f32 %v814_v54, 0.0  ;;  %v4157_v47 = vpop.f32.mrb[54].mxu0  ;;  %v4887_v54 = vpop.permute.xlu0 %1655 }
 0x158   : > { %v916_v60 = vmax.f32 %v4157_v47, 0.0  ;;  %v817_v14 = vpop.f32.mrb[55].mxu0  ;;  %5746 = vst [vmem:[#allocation28_spill] sm:$0xff] %v4887_v54  ;;  %v4889_v5 = vpop.permute.xlu1 %1657 }
 0x159   : > { %v914_v16 = vmax.f32 %v817_v14, 0.0  ;;  %5747 = vst [vmem:[#allocation29_spill] sm:$0xff] %v4889_v5 }
 0x15a   : > { %v4879_v49 = vpack.c.bf16 %v916_v60, %v915_v8 }
 0x15b   : > { %v4883_v17 = vpack.c.bf16 %v914_v16, %v913_v40 }
 0x15d   : > { %v4160_v50 = vpop.f32.mrb[56].mxu0 }
 0x15e   : > { %v919_v2 = vmax.f32 %v4160_v50, 0.0  ;;  %v830_v24 = vpop.f32.mrb[57].mxu0 }
 0x15f   : > { %v917_v22 = vmax.f32 %v830_v24, 0.0  ;;  %v4161_v21 = vpop.f32.mrb[58].mxu0 }
 0x160   : > { %v920_v63 = vmax.f32 %v4161_v21, 0.0  ;;  %v833_v29 = vpop.f32.mrb[59].mxu0 }
 0x161   : > { %v918_v47 = vmax.f32 %v833_v29, 0.0 }
 0x162   : > { %v4891_v8 = vpack.c.bf16 %v920_v63, %v919_v2 }
 0x163   : > { %v4893_v60 = vpack.c.bf16 %v918_v47, %v917_v22 }
 0x165   : > { %v4164_v16 = vpop.f32.mrb[60].mxu0 }
 0x166   : > { %v992_v40 = vpop.permute.xlu1 %991  ;;  %1829 = vxpose.xlu0.c.b16.start [1/3] (short) (narrow) %v4689_v62, 16  ;;  %v923_v14 = vmax.f32 %v4164_v16, 0.0  ;;  %v846_v50 = vpop.f32.mrb[61].mxu0 }
 0x167   : > { %v990_v41 = vpop.permute.xlu0 %989  ;;  %v921_v24 = vmax.f32 %v846_v50, 0.0  ;;  %v4165_v35 = vpop.f32.mrb[62].mxu0 }
 0x168   : > { %v924_v21 = vmax.f32 %v4165_v35, 0.0  ;;  %v849_v53 = vpop.f32.mrb[63].mxu0 }
 0x169   : > { %v922_v34 = vmax.f32 %v849_v53, 0.0 }
 0x16a   : > { %v1088_v54 = vpop.permute.xlu1 %1087  ;;  %1830 = vxpose.xlu0.c.b16.cont [2/3] (short) (narrow) %v990_v41, 16  ;;  %v4896_v29 = vpack.c.bf16 %v924_v21, %v923_v14 }
 0x16b   : > { %v1086_v2 = vpop.permute.xlu0 %1085  ;;  %v4898_v63 = vpack.c.bf16 %v922_v34, %v921_v24  ;;  %v1211_v24 = vld [vmem:[%s4491_s6 + $0xf0] sm:$0xff] }
 0x16e   : > { %v1092_v22 = vpop.permute.xlu1 %1091  ;;  %1831 = vxpose.xlu0.c.b16.end [3/3] (short) (narrow) %v1086_v2, 16 }
 0x16f   : > { %v996_v47 = vpop.permute.xlu0 %995 }
 0x172   : > { %v1090_v5 = vpop.permute.xlu1 %1089  ;;  %1952 = vxpose.xlu0.c.b16.start [1/3] (short) (narrow) %v4701_v10, 16 }
 0x173   : > { %v994_v62 = vpop.permute.xlu0 %993 }
 0x174   : > { %1891 = vxpose.xlu1.c.b16.start [1/3] (short) (narrow) %v4687_v61, 16 }
 0x176   : > { %v1096_v16 = vpop.permute.xlu1 %1095  ;;  %1953 = vxpose.xlu0.c.b16.cont [2/3] (short) (narrow) %v994_v62, 16 }
 0x177   : > { %v1000_v35 = vpop.permute.xlu0 %999 }
 0x178   : > { %1892 = vxpose.xlu1.c.b16.cont [2/3] (short) (narrow) %v992_v40, 16 }
 0x17a   : > { %v1094_v53 = vpop.permute.xlu1 %1093  ;;  %1954 = vxpose.xlu0.c.b16.end [3/3] (short) (narrow) %v1090_v5, 16  ;;  %v1212_v5 = vld [vmem:[%s4491_s6 + $0xf8] sm:$0xff] }
 0x17b   : > { %v998_v41 = vpop.permute.xlu0 %997  ;;  %v4911_v21 = vpack.c.bf16 %v1212_v5, %v1211_v24  ;;  %v1218_v5 = vld [vmem:[%s4491_s6 + $0x128] sm:$0xff] }
 0x17c   : > { %1893 = vxpose.xlu1.c.b16.end [3/3] (short) (narrow) %v1088_v54, 16 }
 0x17d   : > { %v1385_v2 = vshll.u32 %v4911_v21, 16 }
 0x17e   : > { %v1100_v34 = vpop.permute.xlu1 %1099  ;;  %2074 = vxpose.xlu0.c.b16.start [1/3] (short) (narrow) %v4713_v26, 16 }
 0x17f   : > { %v1004_v14 = vpop.permute.xlu0 %1003 }
 0x180   : > { %2013 = vxpose.xlu1.c.b16.start [1/3] (short) (narrow) %v4699_v9, 16 }
 0x182   : > { %v1098_v10 = vpop.permute.xlu1 %1097  ;;  %2075 = vxpose.xlu0.c.b16.cont [2/3] (short) (narrow) %v998_v41, 16 }
 0x183   : > { %v1002_v50 = vpop.permute.xlu0 %1001 }
 0x184   : > { %2014 = vxpose.xlu1.c.b16.cont [2/3] (short) (narrow) %v996_v47, 16 }
 0x186   : > { %2076 = vxpose.xlu0.c.b16.end [3/3] (short) (narrow) %v1094_v53, 16 }
 0x187   : > { %v4904_v61 = vpop.permute.xlu1 %1005  ;;  %v1008_v40 = vpop.permute.xlu0 %1007 }
 0x188   : > { %2015 = vxpose.xlu1.c.b16.end [3/3] (short) (narrow) %v1092_v22, 16  ;;  %v1383_v22 = vshrl.u32 %v4911_v21, 16 }
 0x18a   : > { %2196 = vxpose.xlu0.c.b16.start [1/3] (short) (narrow) %v4725_v39, 16  ;;  %v1387_v39 = vrot.slane %v1385_v2, 1  ;;  %v1219_v2 = vld [vmem:[%s4491_s6 + $0x130] sm:$0xff] }
 0x18b   : > { %v4909_v54 = vpop.permute.xlu1 %1101  ;;  %v1104_v9 = vpop.permute.xlu0 %1103 }
 0x18c   : > { %2135 = vxpose.xlu1.c.b16.start [1/3] (short) (narrow) %v4711_v25, 16  ;;  %v1388_v25 = vor.u32 %v1387_v39, %v1383_v22  ;;  %v1220_v22 = vld [vmem:[%s4491_s6 + $0x138] sm:$0xff] }
 0x18e   : > { %2197 = vxpose.xlu0.c.b16.cont [2/3] (short) (narrow) %v1002_v50, 16 }
 0x18f   : > { %v4914_v26 = vpop.permute.xlu1 %1009  ;;  %v1012_v62 = vpop.permute.xlu0 %1011 }
 0x190   : > { %2136 = vxpose.xlu1.c.b16.cont [2/3] (short) (narrow) %v1000_v35, 16  ;;  %v1612_v35 = vrot.slane %v4911_v21, 1 }
 0x192   : > { %2198 = vxpose.xlu0.c.b16.end [3/3] (short) (narrow) %v1098_v10, 16 }
 0x193   : > { %v4917_v47 = vpop.permute.xlu1 %1105  ;;  %v1108_v41 = vpop.permute.xlu0 %1107 }
 0x194   : > { %2137 = vxpose.xlu1.c.b16.end [3/3] (short) (narrow) %v1096_v16, 16  ;;  %v1217_v16 = vld [vmem:[%s4491_s6 + $0x120] sm:$0xff] }
 0x197   : > { %v4920_v53 = vpop.permute.xlu1 %1013  ;;  %v1016_v10 = vpop.permute.xlu0 %1015 }
 0x198   : > { %2257 = vxpose.xlu1.c.b16.start [1/3] (short) (narrow) %v4723_v38, 16  ;;  %v4934_v38 = vpack.c.bf16 %v1218_v5, %v1217_v16 }
 0x19b   : > { %v4923_v50 = vpop.permute.xlu1 %1109  ;;  %1531 = vrot.lane.b32.xlu0 %v1388_v25, %s4420_s8  ;;  %v1112_v39 = vpop.permute.xlu0 %1111 }
 0x19c   : > { %5748 = vst [vmem:[#allocation30_spill] sm:$0xff] %v4923_v50  ;;  %2258 = vxpose.xlu1.c.b16.cont [2/3] (short) (narrow) %v1004_v14, 16  ;;  %v1406_v14 = vshll.u32 %v4934_v38, 16 }
 0x19e   : > { %v1408_v16 = vrot.slane %v1406_v14, 1 }
 0x19f   : > { %1659 = vrot.lane.b32.xlu0 %v1612_v35, %s4419_s7  ;;  %v4928_v24 = vpop.permute.xlu1 %1017  ;;  %v1404_v35 = vshrl.u32 %v4934_v38, 16  ;;  %v1020_v5 = vpop.permute.xlu0 %1019 }
 0x1a0   : > { %5749 = vst [vmem:[#allocation31_spill] sm:$0xff] %v4928_v24  ;;  %2259 = vxpose.xlu1.c.b16.end [3/3] (short) (narrow) %v1100_v34, 16  ;;  %v4944_v34 = vpack.c.bf16 %v1220_v22, %v1219_v2 }
 0x1a2   : > { %v1411_v2 = vshrl.u32 %v4944_v34, 16 }
 0x1a3   : > { %1033 = vrot.lane.b32.xlu0 %v4857_v23, %s4422_s9  ;;  %v4939_v25 = vpop.permute.xlu1 %1113 }
 0x1a4   : > { %2379 = vxpose.xlu1.c.b16.start [1/3] (short) (narrow) %v4737_v52, 16  ;;  %5750 = vst [vmem:[#allocation32_spill] sm:$0xff] %v4939_v25  ;;  %v1413_v52 = vshll.u32 %v4944_v34, 16  ;;  %v1409_v25 = vor.u32 %v1408_v16, %v1404_v35 }
 0x1a6   : > { %v1415_v22 = vrot.slane %v1413_v52, 1  ;;  %v1226_v52 = vld [vmem:[%s4491_s6 + $0x168] sm:$0xff] }
 0x1a7   : > { %1035 = vrot.lane.b32.xlu0 %v4855_v6, %s4422_s9  ;;  %v4950_v24 = vpop.permute.xlu1 %1023 }
 0x1a8   : > { %2380 = vxpose.xlu1.c.b16.cont [2/3] (short) (narrow) %v1008_v40, 16  ;;  %v1116_v40 = vpop.permute.xlu0 %1115  ;;  %v1416_v14 = vor.u32 %v1415_v22, %v1411_v2 }
 0x1ab   : > { %1129 = vrot.lane.b32.xlu0 %v4857_v23, %s4423_s10  ;;  %v4956_v23 = vpop.permute.xlu1 %1119 }
 0x1ac   : > { %2381 = vxpose.xlu1.c.b16.end [3/3] (short) (narrow) %v1104_v9, 16  ;;  %v1615_v9 = vrot.slane %v4934_v38, 1 }
 0x1ae   : > { %v4959_v50 = vpop.permute.xlu0 %1027 }
 0x1af   : > { %1131 = vrot.lane.b32.xlu0 %v4855_v6, %s4423_s10  ;;  %v4963_v35 = vpop.permute.xlu1 %1021 }
 0x1b0   : > { %2501 = vxpose.xlu1.c.b16.start [1/3] (short) (narrow) %v4751_v3, 16  ;;  %v1616_v3 = vrot.slane %v4944_v34, 1 }
 0x1b2   : > { %v4967_v16 = vpop.permute.xlu0 %1123 }
 0x1b3   : > { %1537 = vrot.lane.b32.xlu0 %v1409_v25, %s4420_s8  ;;  %v1225_v25 = vld [vmem:[%s4491_s6 + $0x160] sm:$0xff] }
 0x1b4   : > { %2502 = vxpose.xlu1.c.b16.cont [2/3] (short) (narrow) %v1012_v62, 16  ;;  %v4970_v62 = vpop.permute.xlu1 %1117 }
 0x1b6   : > { %v1026_v2 = vpop.permute.xlu0 %1025 }
 0x1b7   : > { %1539 = vrot.lane.b32.xlu0 %v1416_v14, %s4420_s8  ;;  %v1227_v14 = vld [vmem:[%s4491_s6 + $0x170] sm:$0xff] }
 0x1b8   : > { %2503 = vxpose.xlu1.c.b16.end [3/3] (short) (narrow) %v1108_v41, 16  ;;  %v4977_v41 = vpack.c.bf16 %v1226_v52, %v1225_v25  ;;  %v4979_v22 = vpop.permute.xlu1 %1031 }
 0x1ba   : > { %v4991_v6 = vpop.permute.xlu0 %1121 }
 0x1bb   : > { %1665 = vrot.lane.b32.xlu0 %v1615_v9, %s4419_s7  ;;  %v1228_v9 = vld [vmem:[%s4491_s6 + $0x178] sm:$0xff] }
 0x1bc   : > { %2623 = vxpose.xlu1.c.b16.start [1/3] (short) (narrow) %v4771_v28, 16  ;;  %v1697_v28 = vsel %vm1693_vm2, %v4503_v18, %v4757_v7  ;;  %v4996_v25 = vpop.permute.xlu1 %1127  ;;  %v1432_v18 = vshrl.u32 %v4977_v41, 16 }
 0x1bf   : > { %1667 = vrot.lane.b32.xlu0 %v1616_v3, %s4419_s7  ;;  %v4989_v3 = vpack.c.bf16 %v1228_v9, %v1227_v14 }
 0x1c0   : > { %2624 = vxpose.xlu1.c.b16.cont [2/3] (short) (narrow) %v1016_v10, 16  ;;  %v1434_v10 = vshll.u32 %v4977_v41, 16 }
 0x1c1   : > { %v1441_v52 = vshll.u32 %v4989_v3, 16 }
 0x1c2   : > { %v1436_v7 = vrot.slane %v1434_v10, 1  ;;  %v5010_v10 = vpop.permute.xlu1 %1029 }
 0x1c3   : > { %1041 = vrot.lane.b32.xlu0 %v4883_v17, %s4422_s9 }
 0x1c4   : > { %2625 = vxpose.xlu1.c.b16.end [3/3] (short) (narrow) %v1112_v39, 16  ;;  %v1762_v39 = vsel %vm1758_vm3, %v1697_v28, %v4731_v43  ;;  %v1437_v43 = vor.u32 %v1436_v7, %v1432_v18  ;;  %v1443_v28 = vrot.slane %v1441_v52, 1  ;;  %v1619_v18 = vrot.slane %v4977_v41, 1  ;;  %v1234_v52 = vld [vmem:[%s4491_s6 + $0x1a8] sm:$0xff] }
 0x1c5   : > { %v1910_v9 = vsel %vm1845_vm4, %v1762_v39, 0  ;;  %v1699_v39 = vsel %vm1693_vm2, %v4505_v19, %v4769_v27  ;;  %v1620_v27 = vrot.slane %v4989_v3, 1 }
 0x1c6   : > { %v1764_v7 = vsel %vm1758_vm3, %v1699_v39, %v4741_v55  ;;  %v1701_v55 = vsel %vm1693_vm2, %v4520_v33, %v4781_v37  ;;  %v1215_v39 = vld [vmem:[%s4491_s6 + $0x110] sm:$0xff] }
 0x1c7   : > { %1043 = vrot.lane.b32.xlu0 %v4879_v49, %s4422_s9  ;;  %v1971_v19 = vsel %vm1845_vm4, %v1764_v7, 0 }
 0x1c8   : > { %2745 = vxpose.xlu1.c.b16.start [1/3] (short) (narrow) %v4787_v48, 16  ;;  %v1439_v48 = vshrl.u32 %v4989_v3, 16 }
 0x1cb   : > { %1137 = vrot.lane.b32.xlu0 %v4883_v17, %s4423_s10 }
 0x1cc   : > { %2746 = vxpose.xlu1.c.b16.cont [2/3] (short) (narrow) %v1020_v5, 16  ;;  %v1837_v14 = vpop.trf.xlu0  ;;  %v1444_v5 = vor.u32 %v1443_v28, %v1439_v48  ;;  %v1214_v48 = vld [vmem:[%s4491_s6 + $0x108] sm:$0xff] }
 0x1cd   : > { %4169 = vmatmul.mubr.msk.bf16.vlgmr.msra.gmra.mrb[0].mxu1 %vm1845_vm4, %v1837_v14  ;;  %v5017_v14 = vpop.permute.xlu1 %1125 }
 0x1ce   : > { %4173 = vmatpush3.bf16.xpose.msra.mxu1 %v1910_v9  ;;  %4174 = vmatprep.mubr.msk.bf16.mxu1 %vm4424_vm5, %v5738_v46  ;;  %v1236_v9 = vld [vmem:[%s4491_s6 + $0x1b8] sm:$0xff] }
 0x1cf   : > { %1139 = vrot.lane.b32.xlu0 %v4879_v49, %s4423_s10  ;;  %4178 = vmatprep.subr.bf16.mxu1 %v5738_v46 }
 0x1d0   : > { %2747 = vxpose.xlu1.c.b16.end [3/3] (short) (narrow) %v1116_v40, 16 }
 0x1d3   : > { %1545 = vrot.lane.b32.xlu0 %v1437_v43, %s4420_s8  ;;  %v1213_v43 = vld [vmem:[%s4491_s6 + $0x100] sm:$0xff] }
 0x1d4   : > { %2867 = vxpose.xlu1.c.b16.start [1/3] (short) (narrow) %v4805_v12, 16  ;;  %v1766_v12 = vsel %vm1758_vm3, %v1701_v55, %v4753_v4  ;;  %v1235_v4 = vld [vmem:[%s4491_s6 + $0x1b0] sm:$0xff]  ;;  %v1705_v55 = vsel %vm1693_vm2, %v4532_v44, %v4791_v51 }
 0x1d5   : > { %v2032_v33 = vsel %vm1845_vm4, %v1766_v12, 0 }
 0x1d7   : > { %1547 = vrot.lane.b32.xlu0 %v1444_v5, %s4420_s8 }
 0x1d8   : > { %2868 = vxpose.xlu1.c.b16.cont [2/3] (short) (narrow) %v4950_v24, 16  ;;  %v1233_v24 = vld [vmem:[%s4491_s6 + $0x1a0] sm:$0xff] }
 0x1d9   : > { %v5045_v37 = vpack.c.bf16 %v1234_v52, %v1233_v24  ;;  %v1770_v24 = vsel %vm1758_vm3, %v1705_v55, %v4803_v11 }
 0x1da   : > { %v1899_v40 = vpop.trf.xlu1 }
 0x1db   : > { %1673 = vrot.lane.b32.xlu0 %v1619_v18, %s4419_s7  ;;  %4175 = vmatmul.mubr.msk.bf16.vlgmr.msra.gmra.mrb[4].mxu1 %vm1845_vm4, %v1899_v40  ;;  %v1462_v28 = vshll.u32 %v5045_v37, 16  ;;  %v1216_v18 = vld [vmem:[%s4491_s6 + $0x118] sm:$0xff]  ;;  %v1460_v40 = vshrl.u32 %v5045_v37, 16 }
 0x1dc   : > { %4179 = vmatpush3.bf16.xpose.msra.mxu1 %v1971_v19  ;;  %2869 = vxpose.xlu1.c.b16.end [3/3] (short) (narrow) %v4956_v23, 16  ;;  %v1960_v23 = vpop.trf.xlu0 }
 0x1dd   : > { %4180 = vmatprep.mubr.msk.bf16.mxu1 %vm4424_vm5, %v5738_v46  ;;  %4184 = vmatprep.subr.bf16.mxu1 %v5738_v46  ;;  %v1464_v19 = vrot.slane %v1462_v28, 1 }
 0x1df   : > { %1675 = vrot.lane.b32.xlu0 %v1620_v27, %s4419_s7  ;;  %v1465_v12 = vor.u32 %v1464_v19, %v1460_v40 }
 0x1e0   : > { %2928 = vxpose.xlu1.c.b16.start [1/3] (short) (narrow) %v4821_v57, 16  ;;  %v1703_v57 = vsel %vm1693_vm2, %v4523_v36, %v4763_v20  ;;  %v5065_v20 = vpack.c.bf16 %v1214_v48, %v1213_v43 }
 0x1e1   : > { %v1768_v5 = vsel %vm1758_vm3, %v1703_v57, %v4779_v32  ;;  %v5077_v32 = vpack.c.bf16 %v1216_v18, %v1215_v39  ;;  %v2154_v57 = vsel %vm1845_vm4, %v1770_v24, 0  ;;  %v1244_v39 = vld [vmem:[%s4491_s6 + $0x1f8] sm:$0xff] }
 0x1e2   : > { %v2093_v7 = vsel %vm1845_vm4, %v1768_v5, 0  ;;  %v1390_v44 = vshrl.u32 %v5065_v20, 16 }
 0x1e3   : > { %1049 = vrot.lane.b32.xlu0 %v4898_v63, %s4422_s9  ;;  %4181 = vmatmul.mubr.msk.bf16.vlgmr.msra.gmra.mrb[8].mxu1 %vm1845_vm4, %v1960_v23  ;;  %v1397_v28 = vshrl.u32 %v5077_v32, 16 }
 0x1e4   : > { %4185 = vmatpush3.bf16.xpose.msra.mxu1 %v2032_v33  ;;  %2929 = vxpose.xlu1.c.b16.cont [2/3] (short) (narrow) %v1026_v2, 16  ;;  %v5060_v2 = vpack.c.bf16 %v1236_v9, %v1235_v4  ;;  %v2082_v52 = vpop.trf.xlu0  ;;  %v1399_v33 = vshll.u32 %v5077_v32, 16  ;;  %v1241_v4 = vld [vmem:[%s4491_s6 + $0x1e0] sm:$0xff]  ;;  %v1242_v9 = vld [vmem:[%s4491_s6 + $0x1e8] sm:$0xff] }
 0x1e5   : > { %4186 = vmatprep.mubr.msk.bf16.mxu1 %vm4424_vm5, %v5738_v46  ;;  %4190 = vmatprep.subr.bf16.mxu1 %v5738_v46  ;;  %v5098_v11 = vpack.c.bf16 %v1242_v9, %v1241_v4  ;;  %v1221_v4 = vld [vmem:[%s4491_s6 + $0x140] sm:$0xff]  ;;  %v1222_v9 = vld [vmem:[%s4491_s6 + $0x148] sm:$0xff] }
 0x1e6   : > { %v2021_v36 = vpop.trf.xlu1  ;;  %v1469_v27 = vshll.u32 %v5060_v2, 16  ;;  %v1401_v5 = vrot.slane %v1399_v33, 1 }
 0x1e7   : > { %1051 = vrot.lane.b32.xlu0 %v4896_v29, %s4422_s9 }
 0x1e8   : > { %2930 = vxpose.xlu1.c.b16.end [3/3] (short) (narrow) %v4991_v6, 16  ;;  %v1392_v6 = vshll.u32 %v5065_v20, 16  ;;  %v1471_v23 = vrot.slane %v1469_v27, 1  ;;  %v1402_v40 = vor.u32 %v1401_v5, %v1397_v28  ;;  %v1488_v27 = vshrl.u32 %v5098_v11, 16 }
 0x1ea   : > { %v1394_v51 = vrot.slane %v1392_v6, 1 }
 0x1eb   : > { %1145 = vrot.lane.b32.xlu0 %v4898_v63, %s4423_s10  ;;  %4187 = vmatmul.mubr.msk.bf16.vlgmr.msra.gmra.mrb[12].mxu1 %vm1845_vm4, %v2021_v36  ;;  %v1243_v36 = vld [vmem:[%s4491_s6 + $0x1f0] sm:$0xff] }
 0x1ec   : > { %4191 = vmatpush3.bf16.xpose.msra.mxu1 %v2093_v7  ;;  %3111 = vxpose.xlu1.c.b16.start [1/3] (short) (narrow) %v4835_v30, 16  ;;  %v1467_v30 = vshrl.u32 %v5060_v2, 16  ;;  %v1395_v48 = vor.u32 %v1394_v51, %v1390_v44 }
 0x1ed   : > { %4192 = vmatprep.mubr.msk.bf16.mxu1 %vm4424_vm5, %v5738_v46  ;;  %4196 = vmatprep.subr.bf16.mxu1 %v5738_v46 }
 0x1ee   : > { %v1472_v43 = vor.u32 %v1471_v23, %v1467_v30  ;;  %v1709_v30 = vsel %vm1693_vm2, %v4555_v0, %v4813_v31  ;;  %v1614_v0 = vrot.slane %v5077_v32, 1 }
 0x1ef   : > { %1147 = vrot.lane.b32.xlu0 %v4896_v29, %s4423_s10  ;;  %v1774_v44 = vsel %vm1758_vm3, %v1709_v30, %v4827_v59  ;;  %v1711_v59 = vsel %vm1693_vm2, %v4570_v15, %v4815_v42  ;;  %v1223_v15 = vld [vmem:[%s4491_s6 + $0x150] sm:$0xff]  ;;  %v1224_v42 = vld [vmem:[%s4491_s6 + $0x158] sm:$0xff] }
 0x1f0   : > { %3112 = vxpose.xlu1.c.b16.cont [2/3] (short) (narrow) %v4979_v22, 16  ;;  %v1707_v22 = vsel %vm1693_vm2, %v4547_v58, %v4793_v56  ;;  %v1623_v58 = vrot.slane %v5045_v37, 1  ;;  %v1490_v56 = vshll.u32 %v5098_v11, 16  ;;  %v2204_v51 = vpop.trf.xlu0  ;;  %v2276_v31 = vsel %vm1845_vm4, %v1774_v44, 0 }
 0x1f1   : > { %v1772_v18 = vsel %vm1758_vm3, %v1707_v22, %v4807_v13  ;;  %v1624_v13 = vrot.slane %v5060_v2, 1 }
 0x1f2   : > { %v2143_v7 = vpop.trf.xlu1  ;;  %v2215_v19 = vsel %vm1845_vm4, %v1772_v18, 0  ;;  %v1492_v6 = vrot.slane %v1490_v56, 1 }
 0x1f3   : > { %1553 = vrot.lane.b32.xlu0 %v1465_v12, %s4420_s8  ;;  %4193 = vmatmul.mubr.msk.bf16.vlgmr.msra.gmra.mrb[16].mxu1 %vm1845_vm4, %v2082_v52  ;;  %v1613_v12 = vrot.slane %v5065_v20, 1 }
 0x1f4   : > { %4197 = vmatpush3.bf16.xpose.msra.mxu1 %v2154_v57  ;;  %3113 = vxpose.xlu1.c.b16.end [3/3] (short) (narrow) %v4996_v25, 16  ;;  %v5115_v25 = vpack.c.bf16 %v1244_v39, %v1243_v36  ;;  %v1493_v23 = vor.u32 %v1492_v6, %v1488_v27  ;;  %v1627_v57 = vrot.slane %v5098_v11, 1  ;;  %v5751_v36 = vld [vmem:[#allocation23_spill] sm:$0xff]  ;;  %v5167_v39 = vpack.c.bf16 %v1224_v42, %v1223_v15  ;;  %v5752_v15 = vld [vmem:[#allocation8_spill] sm:$0xff] }
 0x1f5   : > { %4198 = vmatprep.mubr.msk.bf16.mxu1 %vm4424_vm5, %v5738_v46  ;;  %4202 = vmatprep.subr.bf16.mxu1 %v5738_v46 }
 0x1f6   : > { %v1497_v55 = vshll.u32 %v5115_v25, 16  ;;  %v1495_v24 = vshrl.u32 %v5115_v25, 16  ;;  %v1628_v5 = vrot.slane %v5115_v25, 1 }
 0x1f7   : > { %1555 = vrot.lane.b32.xlu0 %v1472_v43, %s4420_s8  ;;  %v1776_v43 = vsel %vm1758_vm3, %v1711_v59, %v4829_v1 }
 0x1f8   : > { %1533 = vrot.lane.b32.xlu1 %v1395_v48, %s4420_s8  ;;  %v1499_v52 = vrot.slane %v1497_v55, 1  ;;  %v5156_v48 = vpack.c.bf16 %v1222_v9, %v1221_v4  ;;  %v2337_v28 = vsel %vm1845_vm4, %v1776_v43, 0  ;;  %v1231_v4 = vld [vmem:[%s4491_s6 + $0x190] sm:$0xff]  ;;  %v1232_v9 = vld [vmem:[%s4491_s6 + $0x198] sm:$0xff] }
 0x1fa   : > { %v1500_v33 = vor.u32 %v1499_v52, %v1495_v24  ;;  %v1420_v1 = vshll.u32 %v5156_v48, 16  ;;  %v1418_v56 = vshrl.u32 %v5156_v48, 16  ;;  %v1618_v52 = vrot.slane %v5167_v39, 1 }
 0x1fb   : > { %1681 = vrot.lane.b32.xlu0 %v1623_v58, %s4419_s7  ;;  %4199 = vmatmul.mubr.msk.bf16.vlgmr.msra.gmra.mrb[20].mxu1 %vm1845_vm4, %v2143_v7 }
 0x1fc   : > { %4203 = vmatpush3.bf16.xpose.msra.mxu1 %v2215_v19  ;;  %1535 = vrot.lane.b32.xlu1 %v1402_v40, %s4420_s8  ;;  %v1422_v7 = vrot.slane %v1420_v1, 1  ;;  %v1427_v40 = vshll.u32 %v5167_v39, 16 }
 0x1fd   : > { %4204 = vmatprep.mubr.msk.bf16.mxu1 %vm4424_vm5, %v5738_v46  ;;  %4208 = vmatprep.subr.bf16.mxu1 %v5738_v46 }
 0x1fe   : > { %v2265_v22 = vpop.trf.xlu1  ;;  %v1423_v27 = vor.u32 %v1422_v7, %v1418_v56  ;;  %v1429_v6 = vrot.slane %v1427_v40, 1 }
 0x1ff   : > { %1683 = vrot.lane.b32.xlu0 %v1624_v13, %s4419_s7 }
 0x200   : > { %1661 = vrot.lane.b32.xlu1 %v1613_v12, %s4419_s7 }
 0x203   : > { %1561 = vrot.lane.b32.xlu0 %v1493_v23, %s4420_s8  ;;  %4205 = vmatmul.mubr.msk.bf16.vlgmr.msra.gmra.mrb[24].mxu1 %vm1845_vm4, %v2204_v51  ;;  %v1617_v23 = vrot.slane %v5156_v48, 1 }
 0x204   : > { %4209 = vmatpush3.bf16.xpose.msra.mxu1 %v2276_v31  ;;  %1663 = vrot.lane.b32.xlu1 %v1614_v0, %s4419_s7  ;;  %v1229_v0 = vld [vmem:[%s4491_s6 + $0x180] sm:$0xff]  ;;  %v1230_v31 = vld [vmem:[%s4491_s6 + $0x188] sm:$0xff] }
 0x205   : > { %4210 = vmatprep.mubr.msk.bf16.mxu1 %vm4424_vm5, %v5738_v46  ;;  %4214 = vmatprep.subr.bf16.mxu1 %v5738_v46 }
 0x207   : > { %1563 = vrot.lane.b32.xlu0 %v1500_v33, %s4420_s8  ;;  %v5203_v33 = vpack.c.bf16 %v1230_v31, %v1229_v0 }
 0x208   : > { %1037 = vrot.lane.b32.xlu1 %v4873_v45, %s4422_s9 }
 0x209   : > { %v1448_v43 = vshll.u32 %v5203_v33, 16 }
 0x20b   : > { %1689 = vrot.lane.b32.xlu0 %v1627_v57, %s4419_s7  ;;  %4211 = vmatmul.mubr.msk.bf16.vlgmr.msra.gmra.mrb[28].mxu1 %vm1845_vm4, %v2265_v22  ;;  %v5214_v22 = vpack.c.bf16 %v1232_v9, %v1231_v4 }
 0x20c   : > { %4215 = vmatpush3.bf16.xpose.msra.mxu1 %v2337_v28  ;;  %1039 = vrot.lane.b32.xlu1 %v5751_v36, %s4422_s9 }
 0x20d   : > { %v1532_v18 = vpop.permute.xlu0 %1531  ;;  %4216 = vmatprep.mubr.msk.bf16.mxu1 %vm4424_vm5, %v5738_v46  ;;  %4220 = vmatprep.subr.bf16.mxu1 %v5738_v46  ;;  %v1455_v1 = vshll.u32 %v5214_v22, 16  ;;  %v1453_v56 = vshrl.u32 %v5214_v22, 16  ;;  %v1622_v4 = vrot.slane %v5214_v22, 1 }
 0x20e   : > { %v1725_v58 = vsel %vm1693_vm2, %v4911_v21, %v1532_v18  ;;  %v1425_v21 = vshrl.u32 %v5167_v39, 16 }
 0x20f   : > { %1691 = vrot.lane.b32.xlu0 %v1628_v5, %s4419_s7  ;;  %v1450_v5 = vrot.slane %v1448_v43, 1  ;;  %v1457_v7 = vrot.slane %v1455_v1, 1  ;;  %v5754_v1 = vld [vmem:[#allocation10_spill] sm:$0xff] }
 0x210   : > { %1133 = vrot.lane.b32.xlu1 %v4873_v45, %s4423_s10  ;;  %v1430_v12 = vor.u32 %v1429_v6, %v1425_v21  ;;  %v5753_v6 = vld [vmem:[#allocation9_spill] sm:$0xff] }
 0x211   : > { %v1660_v19 = vpop.permute.xlu0 %1659  ;;  %v1458_v21 = vor.u32 %v1457_v7, %v1453_v56 }
 0x212   : > { %v5180_v13 = vsel %vm1758_vm3, %v1725_v58, %v1660_v19  ;;  %v1237_v19 = vld [vmem:[%s4491_s6 + $0x1c0] sm:$0xff] }
 0x214   : > { %1135 = vrot.lane.b32.xlu1 %v5751_v36, %s4423_s10 }
 0x215   : > { %v5185_v55 = vpop.permute.xlu0 %1033 }
 0x218   : > { %1541 = vrot.lane.b32.xlu1 %v1423_v27, %s4420_s8  ;;  %v1238_v27 = vld [vmem:[%s4491_s6 + $0x1c8] sm:$0xff] }
 0x219   : > { %v5188_v30 = vpop.permute.xlu0 %1035 }
 0x21c   : > { %1543 = vrot.lane.b32.xlu1 %v1430_v12, %s4420_s8 }
 0x21d   : > { %v5192_v24 = vpop.permute.xlu0 %1129 }
 0x220   : > { %1669 = vrot.lane.b32.xlu1 %v1617_v23, %s4419_s7  ;;  %v1239_v23 = vld [vmem:[%s4491_s6 + $0x1d0] sm:$0xff] }
 0x221   : > { %v5196_v44 = vpop.permute.xlu0 %1131 }
 0x224   : > { %1671 = vrot.lane.b32.xlu1 %v1618_v52, %s4419_s7  ;;  %v1240_v52 = vld [vmem:[%s4491_s6 + $0x1d8] sm:$0xff] }
 0x225   : > { %v1538_v51 = vpop.permute.xlu0 %1537  ;;  %v5246_v0 = vpack.c.bf16 %v1240_v52, %v1239_v23 }
 0x226   : > { %v1731_v57 = vsel %vm1693_vm2, %v4934_v38, %v1538_v51  ;;  %v1446_v38 = vshrl.u32 %v5203_v33, 16  ;;  %v1621_v51 = vrot.slane %v5203_v33, 1 }
 0x227   : > { %v1483_v43 = vshll.u32 %v5246_v0, 16 }
 0x228   : > { %1045 = vrot.lane.b32.xlu1 %v4893_v60, %s4422_s9  ;;  %v1451_v58 = vor.u32 %v1450_v5, %v1446_v38  ;;  %v1481_v38 = vshrl.u32 %v5246_v0, 16 }
 0x229   : > { %v5205_v59 = vpop.permute.xlu0 %1539  ;;  %v1485_v5 = vrot.slane %v1483_v43, 1 }
 0x22b   : > { %v1486_v7 = vor.u32 %v1485_v5, %v1481_v38  ;;  %v5759_v5 = vld [vmem:[#allocation12_spill] sm:$0xff] }
 0x22c   : > { %1047 = vrot.lane.b32.xlu1 %v4891_v8, %s4422_s9 }
 0x22d   : > { %2318 = vxpose.xlu0.c.b16.start [1/3] (short) (narrow) %v5752_v15, 16  ;;  %v1666_v42 = vpop.permute.xlu0 %1665  ;;  %v5255_v15 = vpop.trf.xlu1 }
 0x22e   : > { %v5218_v28 = vsel %vm1758_vm3, %v1731_v57, %v1666_v42 }
 0x230   : > { %1141 = vrot.lane.b32.xlu1 %v4893_v60, %s4423_s10 }
 0x231   : > { %2319 = vxpose.xlu0.c.b16.cont [2/3] (short) (narrow) %v4904_v61, 16  ;;  %v5225_v18 = vpop.permute.xlu0 %1667  ;;  %v5236_v61 = vpack.c.bf16 %v1238_v27, %v1237_v19  ;;  %v5263_v56 = vpop.trf.xlu1 }
 0x233   : > { %v1474_v9 = vshrl.u32 %v5236_v61, 16  ;;  %v1625_v27 = vrot.slane %v5236_v61, 1 }
 0x234   : > { %1143 = vrot.lane.b32.xlu1 %v4891_v8, %s4423_s10 }
 0x235   : > { %2320 = vxpose.xlu0.c.b16.end [3/3] (short) (narrow) %v4909_v54, 16  ;;  %v5231_v40 = vpop.permute.xlu0 %1041  ;;  %v1476_v54 = vshll.u32 %v5236_v61, 16 }
 0x237   : > { %v1478_v57 = vrot.slane %v1476_v54, 1 }
 0x238   : > { %1549 = vrot.lane.b32.xlu1 %v1451_v58, %s4420_s8 }
 0x239   : > { %2440 = vxpose.xlu0.c.b16.start [1/3] (short) (narrow) %v5753_v6, 16  ;;  %v5239_v12 = vpop.permute.xlu0 %1043  ;;  %v5755_v6 = vld [vmem:[#allocation30_spill] sm:$0xff] }
 0x23c   : > { %1551 = vrot.lane.b32.xlu1 %v1458_v21, %s4420_s8  ;;  %v5271_v21 = vpop.trf.xlu1 }
 0x23d   : > { %2441 = vxpose.xlu0.c.b16.cont [2/3] (short) (narrow) %v4914_v26, 16  ;;  %v5249_v31 = vpop.permute.xlu0 %1137  ;;  %v1479_v26 = vor.u32 %v1478_v57, %v1474_v9  ;;  %v5757_v57 = vld [vmem:[#allocation31_spill] sm:$0xff] }
 0x240   : > { %1677 = vrot.lane.b32.xlu1 %v1621_v51, %s4419_s7 }
 0x241   : > { %2442 = vxpose.xlu0.c.b16.end [3/3] (short) (narrow) %v4917_v47, 16  ;;  %v5258_v42 = vpop.permute.xlu0 %1139 }
 0x244   : > { %1679 = vrot.lane.b32.xlu1 %v1622_v4, %s4419_s7  ;;  %v5282_v4 = vpop.trf.xlu1 }
 0x245   : > { %2562 = vxpose.xlu0.c.b16.start [1/3] (short) (narrow) %v5754_v1, 16  ;;  %v1546_v58 = vpop.permute.xlu0 %1545 }
 0x246   : > { %v1739_v47 = vsel %vm1693_vm2, %v4977_v41, %v1546_v58  ;;  %v5756_v41 = vld [vmem:[#allocation11_spill] sm:$0xff] }
 0x248   : > { %1557 = vrot.lane.b32.xlu1 %v1479_v26, %s4420_s8  ;;  %v2875_v26 = vpop.trf.xlu1 }
 0x249   : > { %2563 = vxpose.xlu0.c.b16.cont [2/3] (short) (narrow) %v4920_v53, 16  ;;  %v1548_v19 = vpop.permute.xlu0 %1547  ;;  %v1626_v53 = vrot.slane %v5246_v0, 1 }
 0x24a   : > { %v1741_v51 = vsel %vm1693_vm2, %v4989_v3, %v1548_v19  ;;  %v5758_v3 = vld [vmem:[#allocation32_spill] sm:$0xff] }
 0x24c   : > { %1559 = vrot.lane.b32.xlu1 %v1486_v7, %s4420_s8  ;;  %v5297_v58 = vpop.trf.xlu1 }
 0x24d   : > { %2564 = vxpose.xlu0.c.b16.end [3/3] (short) (narrow) %v5755_v6, 16  ;;  %v1674_v23 = vpop.permute.xlu0 %1673 }
 0x24e   : > { %v5275_v52 = vsel %vm1758_vm3, %v1739_v47, %v1674_v23 }
 0x250   : > { %1685 = vrot.lane.b32.xlu1 %v1625_v27, %s4419_s7  ;;  %v5760_v27 = vld [vmem:[#allocation13_spill] sm:$0xff] }
 0x251   : > { %2684 = vxpose.xlu0.c.b16.start [1/3] (short) (narrow) %v5756_v41, 16  ;;  %v1676_v54 = vpop.permute.xlu0 %1675 }
 0x252   : > { %v5285_v9 = vsel %vm1758_vm3, %v1741_v51, %v1676_v54  ;;  %v5302_v19 = vpop.trf.xlu1 }
 0x254   : > { %1687 = vrot.lane.b32.xlu1 %v1626_v53, %s4419_s7 }
 0x255   : > { %2685 = vxpose.xlu0.c.b16.cont [2/3] (short) (narrow) %v5757_v57, 16  ;;  %v5289_v43 = vpop.permute.xlu0 %1049 }
 0x259   : > { %2686 = vxpose.xlu0.c.b16.end [3/3] (short) (narrow) %v5758_v3, 16  ;;  %v5292_v38 = vpop.permute.xlu0 %1051 }
 0x25d   : > { %2806 = vxpose.xlu0.c.b16.start [1/3] (short) (narrow) %v5759_v5, 16  ;;  %v5295_v1 = vpop.permute.xlu0 %1145 }
 0x261   : > { %2807 = vxpose.xlu0.c.b16.cont [2/3] (short) (narrow) %v4963_v35, 16  ;;  %v5300_v7 = vpop.permute.xlu0 %1147 }
 0x265   : > { %2808 = vxpose.xlu0.c.b16.end [3/3] (short) (narrow) %v4970_v62, 16  ;;  %v1554_v47 = vpop.permute.xlu0 %1553 }
 0x266   : > { %v1747_v51 = vsel %vm1693_vm2, %v5045_v37, %v1554_v47  ;;  %v5761_v37 = vld [vmem:[#allocation14_spill] sm:$0xff] }
 0x269   : > { %2989 = vxpose.xlu0.c.b16.start [1/3] (short) (narrow) %v5760_v27, 16  ;;  %v1556_v6 = vpop.permute.xlu0 %1555 }
 0x26a   : > { %v1534_v23 = vpop.permute.xlu1 %1533  ;;  %v1749_v54 = vsel %vm1693_vm2, %v5060_v2, %v1556_v6  ;;  %v5762_v6 = vld [vmem:[#allocation20_spill] sm:$0xff] }
 0x26b   : > { %v1727_v57 = vsel %vm1693_vm2, %v5065_v20, %v1534_v23 }
 0x26d   : > { %2990 = vxpose.xlu0.c.b16.cont [2/3] (short) (narrow) %v4959_v50, 16  ;;  %v1682_v53 = vpop.permute.xlu0 %1681 }
 0x26e   : > { %v1536_v41 = vpop.permute.xlu1 %1535  ;;  %v5310_v35 = vsel %vm1758_vm3, %v1747_v51, %v1682_v53  ;;  %v1733_v51 = vsel %vm1693_vm2, %v4944_v34, %v5205_v59 }
 0x26f   : > { %v1729_v27 = vsel %vm1693_vm2, %v5077_v32, %v1536_v41  ;;  %v1798_v41 = vsel %vm1758_vm3, %v1733_v51, %v5225_v18 }
 0x271   : > { %2991 = vxpose.xlu0.c.b16.end [3/3] (short) (narrow) %v4967_v16, 16  ;;  %v1684_v62 = vpop.permute.xlu0 %1683 }
 0x272   : > { %v1662_v3 = vpop.permute.xlu1 %1661  ;;  %v5318_v5 = vsel %vm1758_vm3, %v1749_v54, %v1684_v62 }
 0x273   : > { %v5321_v50 = vsel %vm1758_vm3, %v1727_v57, %v1662_v3  ;;  %v5765_v57 = vld [vmem:[#allocation2_spill] sm:$0xff] }
 0x275   : > { %3050 = vxpose.xlu0.c.b16.start [1/3] (short) (narrow) %v5761_v37, 16  ;;  %v1562_v47 = vpop.permute.xlu0 %1561 }
 0x276   : > { %v1664_v2 = vpop.permute.xlu1 %1663  ;;  %v1755_v32 = vsel %vm1693_vm2, %v5098_v11, %v1562_v47  ;;  %v5763_v11 = vld [vmem:[#allocation19_spill] sm:$0xff]  ;;  %v5766_v47 = vld [vmem:[#allocation17_spill] sm:$0xff] }
 0x277   : > { %v1794_v16 = vsel %vm1758_vm3, %v1729_v27, %v1664_v2  ;;  %3172 = vxpose.xlu1.c.b16.start [1/3] (short) (narrow) %v5762_v6, 16 }
 0x278   : > { %v2886_v20 = vsel %vm1845_vm4, %v1794_v16, 0  ;;  %v5768_v16 = vld [vmem:[#allocation3_spill] sm:$0xff] }
 0x279   : > { %3051 = vxpose.xlu0.c.b16.cont [2/3] (short) (narrow) %v5010_v10, 16  ;;  %4269 = vmatpush3.bf16.xpose.msra.mxu0 %v2886_v20  ;;  %v1564_v23 = vpop.permute.xlu0 %1563 }
 0x27a   : > { %v1038_v53 = vpop.permute.xlu1 %1037  ;;  %4280 = vmatprep.subr.bf16.mxu0 %v5738_v46  ;;  %v1757_v34 = vsel %vm1693_vm2, %v5115_v25, %v1564_v23 }
 0x27b   : > { %3173 = vxpose.xlu1.c.b16.cont [2/3] (short) (narrow) %v5185_v55, 16  ;;  %v3008_v55 = vsel %vm1845_vm4, %v1798_v41, 0 }
 0x27d   : > { %3052 = vxpose.xlu0.c.b16.end [3/3] (short) (narrow) %v5017_v14, 16  ;;  %v1690_v10 = vpop.permute.xlu0 %1689 }
 0x27e   : > { %v1040_v54 = vpop.permute.xlu1 %1039  ;;  %v5341_v62 = vsel %vm1758_vm3, %v1755_v32, %v1690_v10  ;;  %v5771_v32 = vld [vmem:[#allocation4_spill] sm:$0xff] }
 0x27f   : > { %3174 = vxpose.xlu1.c.b16.end [3/3] (short) (narrow) %v5192_v24, 16 }
 0x280   : > { %4271 = vmatmul.mubr.msk.bf16.vlgmr.msra.gmra.mrb[64].mxu0 %vm1845_vm4, %v2875_v26  ;;  %v5764_v26 = vld [vmem:[#allocation15_spill] sm:$0xff] }
 0x281   : > { %3233 = vxpose.xlu0.c.b16.start [1/3] (short) (narrow) %v5763_v11, 16  ;;  %4281 = vmatpush3.bf16.xpose.msra.mxu0 %v3008_v55  ;;  %v1692_v59 = vpop.permute.xlu0 %1691  ;;  %v1713_v3 = vsel %vm1693_vm2, %v5765_v57, %v5764_v26 }
 0x282   : > { %v1134_v18 = vpop.permute.xlu1 %1133  ;;  %v5350_v14 = vsel %vm1758_vm3, %v1757_v34, %v1692_v59  ;;  %4282 = vmatprep.mubr.msk.bf16.mxu0 %vm4424_vm5, %v5738_v46  ;;  %4292 = vmatprep.subr.bf16.mxu0 %v5738_v46 }
 0x283   : > { %3355 = vxpose.xlu1.c.b16.start [1/3] (short) (narrow) %v5751_v36, 16  ;;  %v1778_v36 = vsel %vm1758_vm3, %v1713_v3, %v5766_v47  ;;  %v5776_v3 = vld [vmem:[#allocation26_spill] sm:$0xff]  ;;  %v5777_v47 = vld [vmem:[#allocation7_spill] sm:$0xff] }
 0x284   : > { %v2398_v2 = vsel %vm1845_vm4, %v1778_v36, 0  ;;  %v1721_v36 = vsel %vm1693_vm2, %v5777_v47, %v5776_v3 }
 0x285   : > { %3234 = vxpose.xlu0.c.b16.cont [2/3] (short) (narrow) %v5188_v30, 16 }
 0x286   : > { %v1136_v25 = vpop.permute.xlu1 %1135 }
 0x287   : > { %3356 = vxpose.xlu1.c.b16.cont [2/3] (short) (narrow) %v1040_v54, 16 }
 0x289   : > { %3235 = vxpose.xlu0.c.b16.end [3/3] (short) (narrow) %v5196_v44, 16 }
 0x28a   : > { %v1542_v24 = vpop.permute.xlu1 %1541 }
 0x28b   : > { %3357 = vxpose.xlu1.c.b16.end [3/3] (short) (narrow) %v1136_v25, 16  ;;  %v1735_v30 = vsel %vm1693_vm2, %v5156_v48, %v1542_v24  ;;  %v5769_v48 = vld [vmem:[#allocation18_spill] sm:$0xff] }
 0x28d   : > { %3294 = vxpose.xlu0.c.b16.start [1/3] (short) (narrow) %v4873_v45, 16 }
 0x28e   : > { %v5362_v37 = vpop.permute.xlu1 %1543 }
 0x28f   : > { %3416 = vxpose.xlu1.c.b16.start [1/3] (short) (narrow) %v4883_v17, 16  ;;  %v5767_v17 = vld [vmem:[#allocation16_spill] sm:$0xff] }
 0x290   : > { %v1715_v6 = vsel %vm1693_vm2, %v5768_v16, %v5767_v17  ;;  %v5780_v16 = vld [vmem:[#allocation6_spill] sm:$0xff] }
 0x291   : > { %3295 = vxpose.xlu0.c.b16.cont [2/3] (short) (narrow) %v1038_v53, 16  ;;  %v5770_v53 = vld [vmem:[#allocation21_spill] sm:$0xff] }
 0x292   : > { %v1670_v44 = vpop.permute.xlu1 %1669 }
 0x293   : > { %v5370_v27 = vsel %vm1758_vm3, %v1735_v30, %v1670_v44  ;;  %3417 = vxpose.xlu1.c.b16.cont [2/3] (short) (narrow) %v5231_v40, 16  ;;  %v2326_v45 = vpop.trf.xlu0  ;;  %v1780_v40 = vsel %vm1758_vm3, %v1715_v6, %v5769_v48  ;;  %v5778_v44 = vld [vmem:[#allocation28_spill] sm:$0xff] }
 0x294   : > { %4217 = vmatmul.mubr.msk.bf16.vlgmr.msra.gmra.mrb[32].mxu1 %vm1845_vm4, %v2326_v45  ;;  %v2459_v51 = vsel %vm1845_vm4, %v1780_v40, 0  ;;  %v5781_v40 = vld [vmem:[#allocation29_spill] sm:$0xff] }
 0x295   : > { %4221 = vmatpush3.bf16.xpose.msra.mxu1 %v2398_v2  ;;  %3296 = vxpose.xlu0.c.b16.end [3/3] (short) (narrow) %v1134_v18, 16  ;;  %v5774_v18 = vld [vmem:[#allocation5_spill] sm:$0xff] }
 0x296   : > { %v5378_v20 = vpop.permute.xlu1 %1671  ;;  %4222 = vmatprep.mubr.msk.bf16.mxu1 %vm4424_vm5, %v5738_v46  ;;  %4226 = vmatprep.subr.bf16.mxu1 %v5738_v46 }
 0x297   : > { %3418 = vxpose.xlu1.c.b16.end [3/3] (short) (narrow) %v5249_v31, 16  ;;  %v1717_v31 = vsel %vm1693_vm2, %v5771_v32, %v5770_v53 }
 0x299   : > { %3599 = vxpose.xlu0.c.b16.start [1/3] (short) (narrow) %v4891_v8, 16  ;;  %v5772_v8 = vld [vmem:[#allocation24_spill] sm:$0xff] }
 0x29a   : > { %v1046_v23 = vpop.permute.xlu1 %1045  ;;  %v1782_v10 = vsel %vm1758_vm3, %v1717_v31, %v5772_v8  ;;  %v4425_v31 = vmov 0  }
 0x29b   : > { %3477 = vxpose.xlu1.c.b16.start [1/3] (short) (narrow) %v4879_v49, 16  ;;  %v2520_v59 = vsel %vm1845_vm4, %v1782_v10, 0 }
 0x29c   : > { %4223 = vmatmul.mubr.msk.bf16.vlgmr.msra.gmra.mrb[36].mxu1 %vm1845_vm4, %v5255_v15 }
 0x29d   : > { %4227 = vmatpush3.bf16.xpose.msra.mxu1 %v2459_v51  ;;  %4228 = vmatprep.mubr.msk.bf16.mxu1 %vm4424_vm5, %v5738_v46 }
 0x29e   : > { %v1048_v41 = vpop.permute.xlu1 %1047  ;;  %4232 = vmatprep.subr.bf16.mxu1 %v5738_v46 }
 0x29f   : > { %3600 = vxpose.xlu0.c.b16.cont [2/3] (short) (narrow) %v1048_v41, 16  ;;  %3478 = vxpose.xlu1.c.b16.cont [2/3] (short) (narrow) %v5239_v12, 16  ;;  %v2448_v15 = vpop.trf.xlu0  ;;  %v5773_v12 = vld [vmem:[#allocation22_spill] sm:$0xff] }
 0x2a0   : > { %v5398_v49 = vpop.f32.mrb[0].mxu1  ;;  %v1719_v25 = vsel %vm1693_vm2, %v5774_v18, %v5773_v12 }
 0x2a1   : > { %v4170_v54 = vpop.f32.mrb[1].mxu1 }
 0x2a2   : > { %v1142_v34 = vpop.permute.xlu1 %1141  ;;  %v1888_v55 = vpop.f32.mrb[2].mxu1  ;;  %v2764_v54 = vsel %vm1845_vm4, %v5180_v13, 0  ;;  %v2825_v13 = vsel %vm1845_vm4, %v5321_v50, 0 }
 0x2a3   : > { %3479 = vxpose.xlu1.c.b16.end [3/3] (short) (narrow) %v5258_v42, 16  ;;  %v4171_v11 = vpop.f32.mrb[3].mxu1  ;;  %v5775_v42 = vld [vmem:[#allocation25_spill] sm:$0xff] }
 0x2a4   : > { %4229 = vmatmul.mubr.msk.bf16.vlgmr.msra.gmra.mrb[40].mxu1 %vm1845_vm4, %v2448_v15  ;;  %v1784_v26 = vsel %vm1758_vm3, %v1719_v25, %v5775_v42 }
 0x2a5   : > { %4233 = vmatpush3.bf16.xpose.msra.mxu1 %v2520_v59  ;;  %4234 = vmatprep.mubr.msk.bf16.mxu1 %vm4424_vm5, %v5738_v46  ;;  %v2581_v57 = vsel %vm1845_vm4, %v1784_v26, 0 }
 0x2a6   : > { %v1144_v24 = vpop.permute.xlu1 %1143  ;;  %4238 = vmatprep.subr.bf16.mxu1 %v5738_v46 }
 0x2a7   : > { %3601 = vxpose.xlu0.c.b16.end [3/3] (short) (narrow) %v1144_v24, 16  ;;  %3538 = vxpose.xlu1.c.b16.start [1/3] (short) (narrow) %v4893_v60, 16  ;;  %v1737_v24 = vsel %vm1693_vm2, %v5167_v39, %v5362_v37 }
 0x2a8   : > { %v1802_v42 = vsel %vm1758_vm3, %v1737_v24, %v5378_v20  ;;  %v2947_v20 = vsel %vm1845_vm4, %v5218_v28, 0 }
 0x2a9   : > { %v3130_v3 = vsel %vm1845_vm4, %v1802_v42, 0 }
 0x2aa   : > { %v5444_v51 = vpop.permute.xlu1 %1549 }
 0x2ab   : > { %3721 = vxpose.xlu0.c.b16.start [1/3] (short) (narrow) %v4896_v29, 16  ;;  %3539 = vxpose.xlu1.c.b16.cont [2/3] (short) (narrow) %v1046_v23, 16  ;;  %v2570_v45 = vpop.trf.xlu0 }
 0x2ac   : > { %4235 = vmatmul.mubr.msk.bf16.vlgmr.msra.gmra.mrb[44].mxu1 %vm1845_vm4, %v5263_v56  ;;  %v1786_v56 = vsel %vm1758_vm3, %v1721_v36, %v5778_v44 }
 0x2ad   : > { %4239 = vmatpush3.bf16.xpose.msra.mxu1 %v2581_v57  ;;  %4240 = vmatprep.mubr.msk.bf16.mxu1 %vm4424_vm5, %v5738_v46  ;;  %v2642_v17 = vsel %vm1845_vm4, %v1786_v56, 0  ;;  %v3069_v56 = vsel %vm1845_vm4, %v5370_v27, 0  ;;  %v3191_v27 = vsel %vm1845_vm4, %v5275_v52, 0  ;;  %v1743_v52 = vsel %vm1693_vm2, %v5203_v33, %v5444_v51 }
 0x2ae   : > { %4244 = vmatprep.subr.bf16.mxu1 %v5738_v46  ;;  %v5424_v60 = vpop.f32.mrb[4].mxu1  ;;  %v3496_v33 = vsel %vm1845_vm4, %v5318_v5, 0 }
 0x2af   : > { %3540 = vxpose.xlu1.c.b16.end [3/3] (short) (narrow) %v1142_v34, 16  ;;  %3722 = vxpose.xlu0.c.b16.cont [2/3] (short) (narrow) %v5292_v38, 16  ;;  %v4176_v29 = vpop.f32.mrb[5].mxu1  ;;  %v5779_v38 = vld [vmem:[#allocation27_spill] sm:$0xff] }
 0x2b0   : > { %v1949_v30 = vpop.f32.mrb[6].mxu1  ;;  %v1723_v6 = vsel %vm1693_vm2, %v5780_v16, %v5779_v38 }
 0x2b1   : > { %v4177_v2 = vpop.f32.mrb[7].mxu1  ;;  %v1788_v23 = vsel %vm1758_vm3, %v1723_v6, %v5781_v40  ;;  %v3252_v30 = vsel %vm1845_vm4, %v5285_v9, 0 }
 0x2b2   : > { %v2703_v32 = vsel %vm1845_vm4, %v1788_v23, 0 }
 0x2b3   : > { %3660 = vxpose.xlu1.c.b16.start [1/3] (short) (narrow) %v4898_v63, 16  ;;  %3723 = vxpose.xlu0.c.b16.end [3/3] (short) (narrow) %v5300_v7, 16 }
 0x2b4   : > { %4241 = vmatmul.mubr.msk.bf16.vlgmr.msra.gmra.mrb[48].mxu1 %vm1845_vm4, %v2570_v45 }
 0x2b5   : > { %4245 = vmatpush3.bf16.xpose.msra.mxu1 %v2642_v17  ;;  %4246 = vmatprep.mubr.msk.bf16.mxu1 %vm4424_vm5, %v5738_v46 }
 0x2b6   : > { %4250 = vmatprep.subr.bf16.mxu1 %v5738_v46  ;;  %v5439_v48 = vpop.f32.mrb[8].mxu1 }
 0x2b7   : > { %3661 = vxpose.xlu1.c.b16.cont [2/3] (short) (narrow) %v5289_v43, 16  ;;  %v4182_v63 = vpop.f32.mrb[9].mxu1  ;;  %v1823_v43 = vld [vmem:[%s5699_s3] sm:$0xf]  ;;  %v2692_v10 = vpop.trf.xlu0 }
 0x2b8   : > { %v2010_v7 = vpop.f32.mrb[10].mxu1 }
 0x2b9   : > { %v4183_v53 = vpop.f32.mrb[11].mxu1 }
 0x2bb   : > { %3662 = vxpose.xlu1.c.b16.end [3/3] (short) (narrow) %v5295_v1, 16  ;;  %v5458_v1 = vpop.permute.xlu1 %1551 }
 0x2bc   : > { %4247 = vmatmul.mubr.msk.bf16.vlgmr.msra.gmra.mrb[52].mxu1 %vm1845_vm4, %v5271_v21  ;;  %4375 = vset.pattern.permute.xlu0 %v4425_v31 }
 0x2bd   : > { %4251 = vmatpush3.bf16.xpose.msra.mxu1 %v2703_v32  ;;  %4252 = vmatprep.mubr.msk.bf16.mxu1 %vm4424_vm5, %v5738_v46  ;;  %v3435_v32 = vsel %vm1845_vm4, %v5310_v35, 0 }
 0x2be   : > { %4256 = vmatprep.subr.bf16.mxu1 %v5738_v46  ;;  %v5456_v41 = vpop.f32.mrb[12].mxu1 }
 0x2bf   : > { %4374 = vset.pattern.permute.xlu1 %v4425_v31  ;;  %v4188_v8 = vpop.f32.mrb[13].mxu1  ;;  %v5463_v34 = vpop.permute.xlu1 %1677 }
 0x2c0   : > { %1826 = vperm.xlu1 %4374, %v1823_v43   ;;  %v2071_v21 = vpop.f32.mrb[14].mxu1 }
 0x2c1   : > { %v4189_v15 = vpop.f32.mrb[15].mxu1 }
 0x2c3   : > { %v2814_v12 = vpop.trf.xlu0  ;;  %v1680_v25 = vpop.permute.xlu1 %1679 }
 0x2c4   : > { %4253 = vmatmul.mubr.msk.bf16.vlgmr.msra.gmra.mrb[56].mxu1 %vm1845_vm4, %v2692_v10 }
 0x2c5   : > { %4257 = vmatpush3.bf16.xpose.msra.mxu1 %v2764_v54  ;;  %4258 = vmatprep.mubr.msk.bf16.mxu1 %vm4424_vm5, %v5738_v46  ;;  %v3679_v54 = vsel %vm1845_vm4, %v5341_v62, 0 }
 0x2c6   : > { %4262 = vmatprep.subr.bf16.mxu1 %v5738_v46  ;;  %v5468_v55 = vpop.f32.mrb[16].mxu1 }
 0x2c7   : > { %v4194_v11 = vpop.f32.mrb[17].mxu1  ;;  %v5486_v37 = vpop.permute.xlu1 %1557 }
 0x2c8   : > { %v2132_v59 = vpop.f32.mrb[18].mxu1  ;;  %v1751_v5 = vsel %vm1693_vm2, %v5236_v61, %v5486_v37 }
 0x2c9   : > { %v4195_v18 = vpop.f32.mrb[19].mxu1 }
 0x2cb   : > { %v1560_v36 = vpop.permute.xlu1 %1559 }
 0x2cc   : > { %4259 = vmatmul.mubr.msk.bf16.vlgmr.msra.gmra.mrb[60].mxu1 %vm1845_vm4, %v5282_v4  ;;  %v1753_v35 = vsel %vm1693_vm2, %v5246_v0, %v1560_v36  ;;  %v3740_v0 = vsel %vm1845_vm4, %v5350_v14, 0 }
 0x2cd   : > { %4263 = vmatpush3.bf16.xpose.msra.mxu1 %v2825_v13  ;;  %4264 = vmatprep.mubr.msk.bf16.mxu1 %vm4424_vm5, %v5738_v46 }
 0x2ce   : > { %4274 = vmatprep.subr.bf16.mxu1 %v5738_v46  ;;  %v5482_v26 = vpop.f32.mrb[20].mxu1 }
 0x2cf   : > { %v2997_v57 = vpop.trf.xlu0  ;;  %v4200_v50 = vpop.f32.mrb[21].mxu1 }
 0x2d0   : > { %4283 = vmatmul.mubr.msk.bf16.vlgmr.msra.gmra.mrb[68].mxu0 %vm1845_vm4, %v2997_v57  ;;  %v2193_v39 = vpop.f32.mrb[22].mxu1  ;;  %v1686_v45 = vpop.permute.xlu1 %1685 }
 0x2d1   : > { %4293 = vmatpush3.bf16.xpose.msra.mxu0 %v3130_v3  ;;  %4294 = vmatprep.mubr.msk.bf16.mxu0 %vm4424_vm5, %v5738_v46  ;;  %v4201_v4 = vpop.f32.mrb[23].mxu1  ;;  %v1816_v31 = vsel %vm1758_vm3, %v1751_v5, %v1686_v45 }
 0x2d2   : > { %4304 = vmatprep.subr.bf16.mxu0 %v5738_v46 }
 0x2d4   : > { %4265 = vmatmul.mubr.msk.bf16.vlgmr.msra.gmra.mrb[64].mxu1 %vm1845_vm4, %v2814_v12  ;;  %v1688_v16 = vpop.permute.xlu1 %1687 }
 0x2d5   : > { %4275 = vmatpush3.bf16.xpose.msra.mxu1 %v2947_v20  ;;  %4276 = vmatprep.mubr.msk.bf16.mxu1 %vm4424_vm5, %v5738_v46  ;;  %v1818_v8 = vsel %vm1758_vm3, %v1753_v35, %v1688_v16 }
 0x2d6   : > { %4286 = vmatprep.subr.bf16.mxu1 %v5738_v46  ;;  %v5497_v47 = vpop.f32.mrb[24].mxu1  ;;  %v3618_v61 = vsel %vm1845_vm4, %v1818_v8, 0 }
 0x2d7   : > { %v4206_v29 = vpop.f32.mrb[25].mxu1 }
 0x2d8   : > { %4295 = vmatmul.mubr.msk.bf16.vlgmr.msra.gmra.mrb[72].mxu0 %vm1845_vm4, %v5302_v19  ;;  %v2254_v44 = vpop.f32.mrb[26].mxu1 }
 0x2d9   : > { %4305 = vmatpush3.bf16.xpose.msra.mxu0 %v3252_v30  ;;  %4306 = vmatprep.mubr.msk.bf16.mxu0 %vm4424_vm5, %v5738_v46  ;;  %v4207_v28 = vpop.f32.mrb[27].mxu1 }
 0x2da   : > { %4316 = vmatprep.subr.bf16.mxu0 %v5738_v46 }
 0x2db   : > { %v3058_v17 = vpop.trf.xlu0 }
 0x2dc   : > { %4277 = vmatmul.mubr.msk.bf16.vlgmr.msra.gmra.mrb[68].mxu1 %vm1845_vm4, %v5297_v58  ;;  %v1745_v58 = vsel %vm1693_vm2, %v5214_v22, %v5458_v1  ;;  %v1808_v22 = vsel %vm1758_vm3, %v1743_v52, %v5463_v34  ;;  %v3557_v1 = vsel %vm1845_vm4, %v1816_v31, 0 }
 0x2dd   : > { %4287 = vmatpush3.bf16.xpose.msra.mxu1 %v3069_v56  ;;  %4288 = vmatprep.mubr.msk.bf16.mxu1 %vm4424_vm5, %v5738_v46  ;;  %v1810_v6 = vsel %vm1758_vm3, %v1745_v58, %v1680_v25  ;;  %v3180_v7 = vpop.trf.xlu1  ;;  %v3313_v23 = vsel %vm1845_vm4, %v1808_v22, 0 }
 0x2de   : > { %4298 = vmatprep.subr.bf16.mxu1 %v5738_v46  ;;  %v5513_v9 = vpop.f32.mrb[28].mxu1  ;;  %v3374_v40 = vsel %vm1845_vm4, %v1810_v6, 0 }
 0x2df   : > { %v4212_v19 = vpop.f32.mrb[29].mxu1 }
 0x2e0   : > { %v2315_v2 = vpop.f32.mrb[30].mxu1 }
 0x2e1   : > { %v4213_v38 = vpop.f32.mrb[31].mxu1 }
 0x2e4   : > { %4289 = vmatmul.mubr.msk.bf16.vlgmr.msra.gmra.mrb[72].mxu1 %vm1845_vm4, %v3058_v17 }
 0x2e5   : > { %4299 = vmatpush3.bf16.xpose.msra.mxu1 %v3191_v27  ;;  %4300 = vmatprep.mubr.msk.bf16.mxu1 %vm4424_vm5, %v5738_v46 }
 0x2e6   : > { %4310 = vmatprep.subr.bf16.mxu1 %v5738_v46 }
 0x2e7   : > { %v3241_v63 = vpop.trf.xlu0 }
 0x2e8   : > { %4307 = vmatmul.mubr.msk.bf16.vlgmr.msra.gmra.mrb[76].mxu0 %vm1845_vm4, %v3241_v63 }
 0x2e9   : > { %4317 = vmatpush3.bf16.xpose.msra.mxu0 %v3374_v40  ;;  %4318 = vmatprep.mubr.msk.bf16.mxu0 %vm4424_vm5, %v5738_v46  ;;  %v3363_v53 = vpop.trf.xlu1 }
 0x2ea   : > { %4328 = vmatprep.subr.bf16.mxu0 %v5738_v46 }
 0x2ec   : > { %4301 = vmatmul.mubr.msk.bf16.vlgmr.msra.gmra.mrb[76].mxu1 %vm1845_vm4, %v3180_v7 }
 0x2ed   : > { %4311 = vmatpush3.bf16.xpose.msra.mxu1 %v3313_v23  ;;  %4312 = vmatprep.mubr.msk.bf16.mxu1 %vm4424_vm5, %v5738_v46 }
 0x2ee   : > { %4322 = vmatprep.subr.bf16.mxu1 %v5738_v46 }
 0x2f0   : > { %4319 = vmatmul.mubr.msk.bf16.vlgmr.msra.gmra.mrb[80].mxu0 %vm1845_vm4, %v3363_v53 }
 0x2f1   : > { %4329 = vmatpush3.bf16.xpose.msra.mxu0 %v3496_v33  ;;  %4330 = vmatprep.mubr.msk.bf16.mxu0 %vm4424_vm5, %v5738_v46 }
 0x2f2   : > { %4340 = vmatprep.subr.bf16.mxu0 %v5738_v46 }
 0x2f3   : > { %v3302_v51 = vpop.trf.xlu0 }
 0x2f4   : > { %4313 = vmatmul.mubr.msk.bf16.vlgmr.msra.gmra.mrb[80].mxu1 %vm1845_vm4, %v3302_v51 }
 0x2f5   : > { %4323 = vmatpush3.bf16.xpose.msra.mxu1 %v3435_v32  ;;  %4324 = vmatprep.mubr.msk.bf16.mxu1 %vm4424_vm5, %v5738_v46  ;;  %v3424_v43 = vpop.trf.xlu1 }
 0x2f6   : > { %4334 = vmatprep.subr.bf16.mxu1 %v5738_v46 }
 0x2fc   : > { %4325 = vmatmul.mubr.msk.bf16.vlgmr.msra.gmra.mrb[84].mxu1 %vm1845_vm4, %v3424_v43 }
 0x2fd   : > { %4335 = vmatpush3.bf16.xpose.msra.mxu1 %v3557_v1  ;;  %4336 = vmatprep.mubr.msk.bf16.mxu1 %vm4424_vm5, %v5738_v46 }
 0x2fe   : > { %4346 = vmatprep.subr.bf16.mxu1 %v5738_v46 }
 0x301   : > { %v3485_v21 = vpop.trf.xlu1 }
 0x302   : > { %4331 = vmatmul.mubr.msk.bf16.vlgmr.msra.gmra.mrb[84].mxu0 %vm1845_vm4, %v3485_v21 }
 0x303   : > { %4341 = vmatpush3.bf16.xpose.msra.mxu0 %v3618_v61  ;;  %4342 = vmatprep.mubr.msk.bf16.mxu0 %vm4424_vm5, %v5738_v46 }
 0x304   : > { %4352 = vmatprep.subr.bf16.mxu0 %v5738_v46 }
 0x305   : > { %v3607_v10 = vpop.trf.xlu0 }
 0x30a   : > { %4343 = vmatmul.mubr.msk.bf16.vlgmr.msra.gmra.mrb[88].mxu0 %vm1845_vm4, %v3607_v10 }
 0x30b   : > { %4353 = vmatpush3.bf16.xpose.msra.mxu0 %v3740_v0  ;;  %4354 = vmatprep.mubr.msk.bf16.mxu0 %vm4424_vm5, %v5738_v46 }
 0x30d   : > { %v3546_v15 = vpop.trf.xlu1 }
 0x30e   : > { %4337 = vmatmul.mubr.msk.bf16.vlgmr.msra.gmra.mrb[88].mxu1 %vm1845_vm4, %v3546_v15 }
 0x30f   : > { %4347 = vmatpush3.bf16.xpose.msra.mxu1 %v3679_v54  ;;  %4348 = vmatprep.mubr.msk.bf16.mxu1 %vm4424_vm5, %v5738_v46 }
 0x311   : > { %v3729_v34 = vpop.trf.xlu0 }
 0x312   : > { %4355 = vmatmul.mubr.msk.bf16.vlgmr.msra.gmra.mrb[92].mxu0 %vm1845_vm4, %v3729_v34 }
 0x319   : > { %v3668_v14 = vpop.trf.xlu1 }
 0x31a   : > { %4349 = vmatmul.mubr.msk.bf16.vlgmr.msra.gmra.mrb[92].mxu1 %vm1845_vm4, %v3668_v14 }
 0x33f   : > { %v5587_v46 = vpop.permute.xlu1 %1826 }
 0x340   : > { %v1886_v62 = vadd.f32 %v5398_v49, %v5587_v46  ;;  %v1947_v11 = vadd.f32 %v5424_v60, %v5587_v46  ;;  %v2008_v59 = vadd.f32 %v5439_v48, %v5587_v46  ;;  %v2069_v12 = vadd.f32 %v5456_v41, %v5587_v46 }
 0x341   : > { %v2130_v18 = vadd.f32 %v5468_v55, %v5587_v46  ;;  %v2191_v25 = vadd.f32 %v5482_v26, %v5587_v46  ;;  %v2252_v13 = vadd.f32 %v5497_v47, %v5587_v46  ;;  %v2313_v49 = vadd.f32 %v5513_v9, %v5587_v46 }
 0x342   : > { %3783 = vst.msk [vmem:[%s5585_s17] sm:$0xf] %vm3782_vm6, %v1886_v62  ;;  %3784 = vst.msk [vmem:[%s5585_s17 + $0x4] sm:$0xf] %vm3782_vm6, %v1947_v11 }
 0x343   : > { %3785 = vst.msk [vmem:[%s5585_s17 + $0x8] sm:$0xf] %vm3782_vm6, %v2008_v59  ;;  %3786 = vst.msk [vmem:[%s5585_s17 + $0xc] sm:$0xf] %vm3782_vm6, %v2069_v12 }
 0x344   : > { %3787 = vst.msk [vmem:[%s5585_s17 + $0x10] sm:$0xf] %vm3782_vm6, %v2130_v18  ;;  %3788 = vst.msk [vmem:[%s5585_s17 + $0x14] sm:$0xf] %vm3782_vm6, %v2191_v25 }
 0x345   : > { %3789 = vst.msk [vmem:[%s5585_s17 + $0x18] sm:$0xf] %vm3782_vm6, %v2252_v13  ;;  %3790 = vst.msk [vmem:[%s5585_s17 + $0x1c] sm:$0xf] %vm3782_vm6, %v2313_v49 }
 0x353   : > { %v2922_v60 = vpop.f32.mrb[64].mxu0 }
 0x354   : > { %v2923_v48 = vadd.f32 %v2922_v60, %v5587_v46  ;;  %v4272_v41 = vpop.f32.mrb[65].mxu0 }
 0x355   : > { %v2925_v55 = vpop.f32.mrb[66].mxu0 }
 0x356   : > { %3800 = vst.msk [vmem:[%s5585_s17 + $0x44] sm:$0xf] %vm3782_vm6, %v2923_v48  ;;  %v4273_v24 = vpop.f32.mrb[67].mxu0 }
 0x367   : > { %v2373_v42 = vpop.f32.mrb[32].mxu1 }
 0x368   : > { %v2374_v26 = vadd.f32 %v2373_v42, %v5587_v46  ;;  %v4218_v57 = vpop.f32.mrb[33].mxu1 }
 0x369   : > { %v2376_v50 = vpop.f32.mrb[34].mxu1 }
 0x36a   : > { %3791 = vst.msk [vmem:[%s5585_s17 + $0x20] sm:$0xf] %vm3782_vm6, %v2374_v26  ;;  %v4219_v3 = vpop.f32.mrb[35].mxu1 }
 0x36f   : > { %v2434_v39 = vpop.f32.mrb[36].mxu1 }
 0x370   : > { %v2435_v37 = vadd.f32 %v2434_v39, %v5587_v46  ;;  %v4224_v4 = vpop.f32.mrb[37].mxu1 }
 0x371   : > { %v2437_v20 = vpop.f32.mrb[38].mxu1 }
 0x372   : > { %3792 = vst.msk [vmem:[%s5585_s17 + $0x24] sm:$0xf] %vm3782_vm6, %v2435_v37  ;;  %v4225_v47 = vpop.f32.mrb[39].mxu1 }
 0x377   : > { %v2495_v36 = vpop.f32.mrb[40].mxu1 }
 0x378   : > { %v2496_v29 = vadd.f32 %v2495_v36, %v5587_v46  ;;  %v4230_v30 = vpop.f32.mrb[41].mxu1 }
 0x379   : > { %v2498_v44 = vpop.f32.mrb[42].mxu1 }
 0x37a   : > { %3793 = vst.msk [vmem:[%s5585_s17 + $0x28] sm:$0xf] %vm3782_vm6, %v2496_v29  ;;  %v4231_v28 = vpop.f32.mrb[43].mxu1 }
 0x37f   : > { %v2556_v56 = vpop.f32.mrb[44].mxu1 }
 0x380   : > { %v2557_v45 = vadd.f32 %v2556_v56, %v5587_v46  ;;  %v4236_v9 = vpop.f32.mrb[45].mxu1 }
 0x381   : > { %v2559_v19 = vpop.f32.mrb[46].mxu1 }
 0x382   : > { %3794 = vst.msk [vmem:[%s5585_s17 + $0x2c] sm:$0xf] %vm3782_vm6, %v2557_v45  ;;  %v4237_v2 = vpop.f32.mrb[47].mxu1 }
 0x387   : > { %v2617_v17 = vpop.f32.mrb[48].mxu1 }
 0x388   : > { %v2618_v38 = vadd.f32 %v2617_v17, %v5587_v46  ;;  %v4242_v16 = vpop.f32.mrb[49].mxu1 }
 0x389   : > { %v2620_v27 = vpop.f32.mrb[50].mxu1 }
 0x38a   : > { %3795 = vst.msk [vmem:[%s5585_s17 + $0x30] sm:$0xf] %vm3782_vm6, %v2618_v38  ;;  %v4243_v58 = vpop.f32.mrb[51].mxu1 }
 0x38f   : > { %v2678_v6 = vpop.f32.mrb[52].mxu1 }
 0x390   : > { %v2679_v63 = vadd.f32 %v2678_v6, %v5587_v46  ;;  %v4248_v7 = vpop.f32.mrb[53].mxu1 }
 0x391   : > { %v2681_v52 = vpop.f32.mrb[54].mxu1 }
 0x392   : > { %3796 = vst.msk [vmem:[%s5585_s17 + $0x34] sm:$0xf] %vm3782_vm6, %v2679_v63  ;;  %v4249_v40 = vpop.f32.mrb[55].mxu1 }
 0x397   : > { %v2739_v22 = vpop.f32.mrb[56].mxu1 }
 0x398   : > { %v2740_v23 = vadd.f32 %v2739_v22, %v5587_v46  ;;  %v4254_v53 = vpop.f32.mrb[57].mxu1 }
 0x399   : > { %v2742_v33 = vpop.f32.mrb[58].mxu1 }
 0x39a   : > { %3797 = vst.msk [vmem:[%s5585_s17 + $0x38] sm:$0xf] %vm3782_vm6, %v2740_v23  ;;  %v4255_v51 = vpop.f32.mrb[59].mxu1 }
 0x39f   : > { %v2800_v32 = vpop.f32.mrb[60].mxu1 }
 0x3a0   : > { %v2801_v5 = vadd.f32 %v2800_v32, %v5587_v46  ;;  %v4260_v31 = vpop.f32.mrb[61].mxu1 }
 0x3a1   : > { %v2803_v43 = vpop.f32.mrb[62].mxu1 }
 0x3a2   : > { %3798 = vst.msk [vmem:[%s5585_s17 + $0x3c] sm:$0xf] %vm3782_vm6, %v2801_v5  ;;  %v4261_v1 = vpop.f32.mrb[63].mxu1 }
 0x3a3   : > { %v3044_v35 = vpop.f32.mrb[68].mxu0 }
 0x3a4   : > { %v3045_v8 = vadd.f32 %v3044_v35, %v5587_v46  ;;  %v4284_v21 = vpop.f32.mrb[69].mxu0 }
 0x3a5   : > { %v3047_v61 = vpop.f32.mrb[70].mxu0 }
 0x3a6   : > { %3802 = vst.msk [vmem:[%s5585_s17 + $0x4c] sm:$0xf] %vm3782_vm6, %v3045_v8  ;;  %v4285_v10 = vpop.f32.mrb[71].mxu0 }
 0x3a7   : > { %v2861_v0 = vpop.f32.mrb[64].mxu1 }
 0x3a8   : > { %v2862_v15 = vadd.f32 %v2861_v0, %v5587_v46  ;;  %v4266_v54 = vpop.f32.mrb[65].mxu1 }
 0x3a9   : > { %v2864_v34 = vpop.f32.mrb[66].mxu1 }
 0x3aa   : > { %3799 = vst.msk [vmem:[%s5585_s17 + $0x40] sm:$0xf] %vm3782_vm6, %v2862_v15  ;;  %v4267_v14 = vpop.f32.mrb[67].mxu1 }
 0x3ab   : > { %v3166_v62 = vpop.f32.mrb[72].mxu0 }
 0x3ac   : > { %v3167_v11 = vadd.f32 %v3166_v62, %v5587_v46  ;;  %v4296_v59 = vpop.f32.mrb[73].mxu0 }
 0x3ad   : > { %v3169_v12 = vpop.f32.mrb[74].mxu0 }
 0x3ae   : > { %3804 = vst.msk [vmem:[%s5585_s17 + $0x54] sm:$0xf] %vm3782_vm6, %v3167_v11  ;;  %v4297_v18 = vpop.f32.mrb[75].mxu0 }
 0x3af   : > { %v2983_v25 = vpop.f32.mrb[68].mxu1 }
 0x3b0   : > { %v2984_v13 = vadd.f32 %v2983_v25, %v5587_v46  ;;  %v4278_v49 = vpop.f32.mrb[69].mxu1 }
 0x3b1   : > { %v2986_v60 = vpop.f32.mrb[70].mxu1 }
 0x3b2   : > { %3801 = vst.msk [vmem:[%s5585_s17 + $0x48] sm:$0xf] %vm3782_vm6, %v2984_v13  ;;  %v4279_v48 = vpop.f32.mrb[71].mxu1 }
 0x3b7   : > { %v3105_v41 = vpop.f32.mrb[72].mxu1 }
 0x3b8   : > { %v3106_v55 = vadd.f32 %v3105_v41, %v5587_v46  ;;  %v4290_v24 = vpop.f32.mrb[73].mxu1 }
 0x3b9   : > { %v3108_v42 = vpop.f32.mrb[74].mxu1 }
 0x3ba   : > { %3803 = vst.msk [vmem:[%s5585_s17 + $0x50] sm:$0xf] %vm3782_vm6, %v3106_v55  ;;  %v4291_v26 = vpop.f32.mrb[75].mxu1 }
 0x3bb   : > { %v3288_v57 = vpop.f32.mrb[76].mxu0 }
 0x3bc   : > { %v3289_v50 = vadd.f32 %v3288_v57, %v5587_v46  ;;  %v4308_v3 = vpop.f32.mrb[77].mxu0 }
 0x3bd   : > { %v3291_v39 = vpop.f32.mrb[78].mxu0 }
 0x3be   : > { %3806 = vst.msk [vmem:[%s5585_s17 + $0x5c] sm:$0xf] %vm3782_vm6, %v3289_v50  ;;  %v4309_v37 = vpop.f32.mrb[79].mxu0 }
 0x3bf   : > { %v3227_v4 = vpop.f32.mrb[76].mxu1 }
 0x3c0   : > { %v3228_v20 = vadd.f32 %v3227_v4, %v5587_v46  ;;  %v4302_v47 = vpop.f32.mrb[77].mxu1 }
 0x3c1   : > { %v3230_v36 = vpop.f32.mrb[78].mxu1 }
 0x3c2   : > { %3805 = vst.msk [vmem:[%s5585_s17 + $0x58] sm:$0xf] %vm3782_vm6, %v3228_v20  ;;  %v4303_v29 = vpop.f32.mrb[79].mxu1 }
 0x3c3   : > { %v3410_v30 = vpop.f32.mrb[80].mxu0 }
 0x3c4   : > { %v3411_v44 = vadd.f32 %v3410_v30, %v5587_v46  ;;  %v4320_v28 = vpop.f32.mrb[81].mxu0 }
 0x3c5   : > { %v3413_v56 = vpop.f32.mrb[82].mxu0 }
 0x3c6   : > { %3808 = vst.msk [vmem:[%s5585_s17 + $0x64] sm:$0xf] %vm3782_vm6, %v3411_v44  ;;  %v4321_v45 = vpop.f32.mrb[83].mxu0 }
 0x3c7   : > { %v3349_v9 = vpop.f32.mrb[80].mxu1 }
 0x3c8   : > { %v3350_v19 = vadd.f32 %v3349_v9, %v5587_v46  ;;  %v4314_v2 = vpop.f32.mrb[81].mxu1 }
 0x3c9   : > { %v3352_v17 = vpop.f32.mrb[82].mxu1 }
 0x3ca   : > { %3807 = vst.msk [vmem:[%s5585_s17 + $0x60] sm:$0xf] %vm3782_vm6, %v3350_v19  ;;  %v4315_v38 = vpop.f32.mrb[83].mxu1 }
 0x3cf   : > { %v3471_v16 = vpop.f32.mrb[84].mxu1 }
 0x3d0   : > { %v3472_v27 = vadd.f32 %v3471_v16, %v5587_v46  ;;  %v4326_v58 = vpop.f32.mrb[85].mxu1 }
 0x3d1   : > { %v3474_v6 = vpop.f32.mrb[86].mxu1 }
 0x3d2   : > { %3809 = vst.msk [vmem:[%s5585_s17 + $0x68] sm:$0xf] %vm3782_vm6, %v3472_v27  ;;  %v4327_v63 = vpop.f32.mrb[87].mxu1 }
 0x3d5   : > { %v3532_v7 = vpop.f32.mrb[84].mxu0 }
 0x3d6   : > { %v3533_v52 = vadd.f32 %v3532_v7, %v5587_v46  ;;  %v4332_v40 = vpop.f32.mrb[85].mxu0 }
 0x3d7   : > { %v3535_v22 = vpop.f32.mrb[86].mxu0 }
 0x3d8   : > { %3810 = vst.msk [vmem:[%s5585_s17 + $0x6c] sm:$0xf] %vm3782_vm6, %v3533_v52  ;;  %v4333_v23 = vpop.f32.mrb[87].mxu0 }
 0x3dd   : > { %v3654_v53 = vpop.f32.mrb[88].mxu0 }
 0x3de   : > { %v3655_v33 = vadd.f32 %v3654_v53, %v5587_v46  ;;  %v4344_v51 = vpop.f32.mrb[89].mxu0 }
 0x3df   : > { %v3657_v32 = vpop.f32.mrb[90].mxu0 }
 0x3e0   : > { %3812 = vst.msk [vmem:[%s5585_s17 + $0x74] sm:$0xf] %vm3782_vm6, %v3655_v33  ;;  %v4345_v5 = vpop.f32.mrb[91].mxu0 }
 0x3e1   : > { %v3593_v31 = vpop.f32.mrb[88].mxu1 }
 0x3e2   : > { %v3594_v43 = vadd.f32 %v3593_v31, %v5587_v46  ;;  %v4338_v1 = vpop.f32.mrb[89].mxu1 }
 0x3e3   : > { %v3596_v35 = vpop.f32.mrb[90].mxu1 }
 0x3e4   : > { %3811 = vst.msk [vmem:[%s5585_s17 + $0x70] sm:$0xf] %vm3782_vm6, %v3594_v43  ;;  %v4339_v8 = vpop.f32.mrb[91].mxu1 }
 0x3e5   : > { %v3776_v21 = vpop.f32.mrb[92].mxu0 }
 0x3e6   : > { %v3777_v61 = vadd.f32 %v3776_v21, %v5587_v46  ;;  %v4356_v10 = vpop.f32.mrb[93].mxu0 }
 0x3e7   : > { %v3779_v0 = vpop.f32.mrb[94].mxu0 }
 0x3e8   : > { %3814 = vst.msk [vmem:[%s5585_s17 + $0x7c] sm:$0xf] %vm3782_vm6, %v3777_v61  ;;  %v4357_v15 = vpop.f32.mrb[95].mxu0 }
 0x3ed   : > { %v3715_v54 = vpop.f32.mrb[92].mxu1 }
 0x3ee   : > { %v3716_v34 = vadd.f32 %v3715_v54, %v5587_v46  ;;  %v4350_v14 = vpop.f32.mrb[93].mxu1 }
 0x3ef   : > { %v3718_v62 = vpop.f32.mrb[94].mxu1 }
 0x3f0   : > { %3813 = vst.msk [vmem:[%s5585_s17 + $0x78] sm:$0xf] %vm3782_vm6, %v3716_v34  ;;  %v4351_v11 = vpop.f32.mrb[95].mxu1 }
 0x3f1 PF: > { %s14_s15 = sadd.s32 1, %s4417_s15  }
 0x3f2   : > { %p11_p5 = scmp.ge.s32.totalorder %s14_s15, 6  }
 0x3f4   :  { %13 = sbr.rel (!%p11_p5) target bundleno = 1 (0x1), region = 69 }

</bundles_post_ra>
